<compile_context>
chip_gen: v6e
topology: v6e:2x2x1
jax: 0.10.0
libtpu: 0.0.40
codegen_flags: <defaults>
</compile_context>

<pallas_src>
import functools
import math

import jax
import jax.numpy as jnp
from jax.experimental import pallas as pl
from jax.experimental.pallas import tpu as pltpu


# ----------------------------------------------------------------------------
# tiling helper
# ----------------------------------------------------------------------------

def _pick_tile(dim, target, quantum):
    """Largest tile <= target that divides `dim` and is a multiple of `quantum`.
    Falls back to the full dim (always legal under the TPU (8,128) block rule)."""
    if dim <= target:
        return dim
    t = (min(target, dim) // quantum) * quantum
    while t >= quantum:
        if dim % t == 0:
            return t
        t -= quantum
    return dim


# ----------------------------------------------------------------------------
# tiled linear (matmul + bias + optional activation)
# ----------------------------------------------------------------------------

def _erf_approx(x):
    # Abramowitz & Stegun 7.1.26 polynomial erf, |err| < 1.5e-7 (f32-level accurate);
    # built from exp/mul/add so it always lowers on Mosaic.
    a1, a2, a3, a4, a5 = 0.254829592, -0.284496736, 1.421413741, -1.453152027, 1.061405429
    p = 0.3275911
    sgn = jnp.where(x >= 0.0, 1.0, -1.0)
    ax = jnp.abs(x)
    t = 1.0 / (1.0 + p * ax)
    poly = ((((a5 * t + a4) * t + a3) * t + a2) * t + a1) * t
    return sgn * (1.0 - poly * jnp.exp(-ax * ax))


def _linear_kernel(x_ref, w_ref, b_ref, o_ref, acc_ref, *, activation):
    @pl.when(pl.program_id(2) == 0)
    def _():
        acc_ref[...] = jnp.zeros_like(acc_ref)

    acc_ref[...] += jnp.dot(x_ref[...], w_ref[...], preferred_element_type=jnp.float32)

    @pl.when(pl.program_id(2) == pl.num_programs(2) - 1)
    def _():
        y = acc_ref[...] + b_ref[...]
        if activation == "relu":
            y = jnp.maximum(y, 0.0)
        elif activation == "gelu":
            y = 0.5 * y * (1.0 + _erf_approx(y * 0.7071067811865476))
        o_ref[...] = y.astype(o_ref.dtype)


def linear(x2d, W, b, activation="none", *, tm=256, tn=256, tk=512):
    """x2d: (M, K); W: (K, N) pre-transposed at init; b: (N,) -> (M, N)."""
    M, K = x2d.shape
    Kw, N = W.shape
    assert Kw == K
    tm = _pick_tile(M, tm, 8)
    tn = _pick_tile(N, tn, 128)
    tk = _pick_tile(K, tk, 128)
    grid = (M // tm, N // tn, K // tk)
    return pl.pallas_call(
        functools.partial(_linear_kernel, activation=activation),
        out_shape=jax.ShapeDtypeStruct((M, N), x2d.dtype),
        grid=grid,
        in_specs=[pl.BlockSpec((tm, tk), lambda i, j, k: (i, k)),
                  pl.BlockSpec((tk, tn), lambda i, j, k: (k, j)),
                  pl.BlockSpec((1, tn), lambda i, j, k: (0, j))],
        out_specs=pl.BlockSpec((tm, tn), lambda i, j, k: (i, j)),
        scratch_shapes=[pltpu.VMEM((tm, tn), jnp.float32)],
        compiler_params=pltpu.CompilerParams(
            dimension_semantics=("parallel", "parallel", "arbitrary")),
    )(x2d, W, b.reshape(1, N))


# ----------------------------------------------------------------------------
# layernorm kernels (row-tiled; residual add / double-LN fused variants)
# ----------------------------------------------------------------------------

def _ln_body(x, g, b, eps):
    mean = jnp.mean(x, axis=-1, keepdims=True)
    xc = x - mean
    var = jnp.mean(xc * xc, axis=-1, keepdims=True)
    return (xc * jax.lax.rsqrt(var + eps)) * g + b


def _ln_kernel(x_ref, g_ref, b_ref, o_ref, *, eps):
    o_ref[...] = _ln_body(x_ref[...], g_ref[...], b_ref[...], eps).astype(o_ref.dtype)


def _add_ln_kernel(x_ref, r_ref, g_ref, b_ref, o_ref, *, eps):
    o_ref[...] = _ln_body(x_ref[...] + r_ref[...], g_ref[...], b_ref[...],
                          eps).astype(o_ref.dtype)


def _ln2_kernel(x_ref, g1_ref, b1_ref, g2_ref, b2_ref, o_ref, *, eps1, eps2):
    y = _ln_body(x_ref[...], g1_ref[...], b1_ref[...], eps1)
    o_ref[...] = _ln_body(y, g2_ref[...], b2_ref[...], eps2).astype(o_ref.dtype)


def _rows_call(kernel, out_dtype, row_args, vec_args, M, D, tm=512):
    tm = _pick_tile(M, tm, 8)
    row_spec = pl.BlockSpec((tm, D), lambda i: (i, 0))
    vec_spec = pl.BlockSpec((1, D), lambda i: (0, 0))
    return pl.pallas_call(
        kernel,
        out_shape=jax.ShapeDtypeStruct((M, D), out_dtype),
        grid=(M // tm,),
        in_specs=[row_spec] * len(row_args) + [vec_spec] * len(vec_args),
        out_specs=row_spec,
        compiler_params=pltpu.CompilerParams(dimension_semantics=("parallel",)),
    )(*row_args, *[v.reshape(1, D) for v in vec_args])


def layernorm(x2d, gamma, beta, *, eps):
    M, D = x2d.shape
    return _rows_call(functools.partial(_ln_kernel, eps=eps), x2d.dtype,
                      (x2d,), (gamma, beta), M, D)


def add_layernorm(x2d, r2d, gamma, beta, *, eps):
    """LayerNorm(x + r) with the residual add fused into the kernel."""
    M, D = x2d.shape
    return _rows_call(functools.partial(_add_ln_kernel, eps=eps), x2d.dtype,
                      (x2d, r2d), (gamma, beta), M, D)


def layernorm2(x2d, g1, b1, g2, b2, *, eps1, eps2):
    """LN2(LN1(x)) fused in one pass (bridge norm followed by the model's shared norm)."""
    M, D = x2d.shape
    return _rows_call(functools.partial(_ln2_kernel, eps1=eps1, eps2=eps2), x2d.dtype,
                      (x2d,), (g1, b1, g2, b2), M, D)


# ----------------------------------------------------------------------------
# fused multi-head attention core (all heads per grid step; bias elided if None)
# ----------------------------------------------------------------------------

def _softmax_lastdim(s):
    m = jnp.max(s, axis=-1, keepdims=True)
    e = jnp.exp(s - m)
    return e * pl.reciprocal(jnp.sum(e, axis=-1, keepdims=True), approx=True)


def _attn_kernel(q_ref, k_ref, v_ref, o_ref, *, scale):
    q = q_ref[0]                      # (H, Sq, Dh)
    k = k_ref[0]                      # (H, Sk, Dh)
    v = v_ref[0]
    s = jnp.einsum("hqd,hkd->hqk", q, k, preferred_element_type=jnp.float32) * scale
    p = _softmax_lastdim(s)
    o_ref[0] = jnp.einsum("hqk,hkd->hqd", p.astype(v.dtype), v,
                          preferred_element_type=jnp.float32).astype(o_ref.dtype)


def _attn_kernel_bias(q_ref, k_ref, v_ref, bias_ref, o_ref, *, scale):
    q = q_ref[0]
    k = k_ref[0]
    v = v_ref[0]
    s = jnp.einsum("hqd,hkd->hqk", q, k, preferred_element_type=jnp.float32) * scale
    s = s + bias_ref[0]               # (Sq, Sk) broadcast over heads
    p = _softmax_lastdim(s)
    o_ref[0] = jnp.einsum("hqk,hkd->hqd", p.astype(v.dtype), v,
                          preferred_element_type=jnp.float32).astype(o_ref.dtype)


def attention_core(q, k, v, bias):
    """q:(B,H,Sq,Dh)  k,v:(B,H,Sk,Dh)  bias: None | (1,Sq,Sk) | (B,Sq,Sk)."""
    B, H, Sq, Dh = q.shape
    Sk = k.shape[2]
    scale = 1.0 / math.sqrt(Dh)
    qkv_specs = [pl.BlockSpec((1, H, Sq, Dh), lambda b: (b, 0, 0, 0)),
                 pl.BlockSpec((1, H, Sk, Dh), lambda b: (b, 0, 0, 0)),
                 pl.BlockSpec((1, H, Sk, Dh), lambda b: (b, 0, 0, 0))]
    if bias is None:
        kernel = functools.partial(_attn_kernel, scale=scale)
        in_specs = qkv_specs
        args = (q, k, v)
    else:
        shared = bias.shape[0] == 1
        bmap = (lambda b: (0, 0, 0)) if shared else (lambda b: (b, 0, 0))
        kernel = functools.partial(_attn_kernel_bias, scale=scale)
        in_specs = qkv_specs + [pl.BlockSpec((1, Sq, Sk), bmap)]
        args = (q, k, v, bias)
    return pl.pallas_call(
        kernel,
        out_shape=jax.ShapeDtypeStruct((B, H, Sq, Dh), q.dtype),
        grid=(B,),
        in_specs=in_specs,
        out_specs=pl.BlockSpec((1, H, Sq, Dh), lambda b: (b, 0, 0, 0)),
        compiler_params=pltpu.CompilerParams(dimension_semantics=("parallel",)),
    )(*args)


# ----------------------------------------------------------------------------
# JAX glue: multi-head attention, transformer layers, bridge, full model
# ----------------------------------------------------------------------------

def _attn_bias(attn_mask, key_padding_mask, B, Sq, Sk):
    if attn_mask is None and key_padding_mask is None:
        return None                               # zero-bias path fully elided
    terms = []
    if attn_mask is not None:
        am = attn_mask
        if am.dtype == jnp.bool_:
            am = jnp.where(am, -1e30, 0.0)        # -1e30 ~ -inf (avoids NaN rows)
        terms.append(am.astype(jnp.float32).reshape(1, Sq, Sk))
    if key_padding_mask is not None:
        kp = jnp.where(key_padding_mask, -1e30, 0.0).astype(jnp.float32)
        terms.append(jnp.broadcast_to(kp.reshape(B, 1, Sk), (B, Sq, Sk)))
    return terms[0] if len(terms) == 1 else terms[0] + terms[1]


def multihead_attention(p, query, key_value, nhead, attn_mask=None,
                        key_padding_mask=None, *, is_self):
    Sq, B, D = query.shape
    Sk = key_value.shape[0]
    Dh = D // nhead

    q2 = query.reshape(Sq * B, D)
    if is_self:
        qkv = linear(q2, p["w_qkv"], p["b_qkv"])               # fused Q/K/V (N = 3D)
        q, k, v = qkv[:, :D], qkv[:, D:2 * D], qkv[:, 2 * D:]
    else:
        q = linear(q2, p["wq"], p["bq"])
        kv = linear(key_value.reshape(Sk * B, D), p["w_kv"], p["b_kv"])   # fused K/V
        k, v = kv[:, :D], kv[:, D:]

    def to_heads(x, S):
        return x.reshape(S, B, nhead, Dh).transpose(1, 2, 0, 3)  # (B, H, S, Dh)

    bias = _attn_bias(attn_mask, key_padding_mask, B, Sq, Sk)
    oh = attention_core(to_heads(q, Sq), to_heads(k, Sk), to_heads(v, Sk), bias)
    o = oh.transpose(2, 0, 1, 3).reshape(Sq * B, D)
    return linear(o, p["wo"], p["bo"]).reshape(Sq, B, D)


def encoder_layer_fwd(p, x, src_mask, src_kpm, nhead):
    S, B, D = x.shape
    a = multihead_attention(p["self_attn"], x, x, nhead, src_mask, src_kpm, is_self=True)
    h = add_layernorm(x.reshape(S * B, D), a.reshape(S * B, D), *p["norm1"], eps=1e-5)
    f = linear(h, *p["lin1"], activation="relu")
    f = linear(f, *p["lin2"])
    out = add_layernorm(h, f, *p["norm2"], eps=1e-5)
    return out.reshape(S, B, D)


def decoder_layer_fwd(p, tgt, memory, tgt_mask, memory_mask, tgt_kpm, mem_kpm, nhead):
    S, B, D = tgt.shape
    a = multihead_attention(p["self_attn"], tgt, tgt, nhead, tgt_mask, tgt_kpm,
                            is_self=True)
    x = add_layernorm(tgt.reshape(S * B, D), a.reshape(S * B, D), *p["norm1"], eps=1e-5)
    x3 = x.reshape(S, B, D)
    c = multihead_attention(p["cross_attn"], x3, memory, nhead, memory_mask, mem_kpm,
                            is_self=False)
    h = add_layernorm(x, c.reshape(S * B, D), *p["norm2"], eps=1e-5)
    f = linear(h, *p["lin1"], activation="relu")
    f = linear(f, *p["lin2"])
    out = add_layernorm(h, f, *p["norm3"], eps=1e-5)
    return out.reshape(S, B, D)


def bridge_fwd(bp, final_norm, x):
    """self.norm(self.w[idx](cat)) of the reference:
    model_norm(ffn_norm(w2(gelu(w1(cat))))) with the two LayerNorms fused."""
    S, B, Din = x.shape
    h = linear(x.reshape(S * B, Din), *bp["w1"], activation="gelu")
    h = linear(h, *bp["w2"])
    D = bp["w2"][0].shape[1]
    out = layernorm2(h, bp["norm"][0], bp["norm"][1], final_norm[0], final_norm[1],
                     eps1=1e-6, eps2=1e-6)
    return out.reshape(S, B, D)


def encoder_decoder_concat_fwd(params, src, src_mask, src_key_padding_mask,
                               tgt, memory_key_padding_mask, tgt_mask,
                               tgt_key_padding_mask, *, nhead):
    # TODO(synk): dropout inside the torch layers is treated as eval (p=0).
    for lp in params["remaining_encoders"]:
        src = encoder_layer_fwd(lp, src, src_mask, src_key_padding_mask, nhead)

    for enc_stack, dec_stack, bridge in zip(params["encoder_stacks"],
                                            params["decoder_stacks"],
                                            params["w"]):
        src_list = []
        for lp in enc_stack:
            src = encoder_layer_fwd(lp, src, src_mask, src_key_padding_mask, nhead)
            src_list.append(src)
        cat = src_list[0] if len(src_list) == 1 else jnp.concatenate(src_list, axis=-1)
        src = bridge_fwd(bridge, params["final_norm"], cat)
        for lp in dec_stack:
            tgt = decoder_layer_fwd(lp, tgt, src, tgt_mask, None,
                                    tgt_key_padding_mask, memory_key_padding_mask, nhead)

    for lp in params["remaining_decoders"]:
        tgt = decoder_layer_fwd(lp, tgt, src, tgt_mask, None,
                                tgt_key_padding_mask, memory_key_padding_mask, nhead)

    S, B, D = tgt.shape
    out = layernorm(tgt.reshape(S * B, D), *params["final_norm"], eps=1e-6)
    return out.reshape(S, B, D)


# ----------------------------------------------------------------------------
# Deterministic parameter init (synthetic; mirrors the module's shapes).
# Weights stored pre-transposed in (in, out) layout so no W.T copy per call.
# ----------------------------------------------------------------------------

def _init_linear_params(key, in_dim, out_dim):
    k1, k2 = jax.random.split(key)
    bound = 1.0 / math.sqrt(in_dim)
    w = jax.random.uniform(k1, (in_dim, out_dim), jnp.float32, -bound, bound)
    b = jax.random.uniform(k2, (out_dim,), jnp.float32, -bound, bound)
    return w, b


def _init_mha(key, D):
    ks = jax.random.split(key, 4)
    wq, bq = _init_linear_params(ks[0], D, D)
    wk, bk = _init_linear_params(ks[1], D, D)
    wv, bv = _init_linear_params(ks[2], D, D)
    wo, bo = _init_linear_params(ks[3], D, D)
    return dict(
        wq=wq, bq=bq, wo=wo, bo=bo,
        w_qkv=jnp.concatenate([wq, wk, wv], axis=1),   # fused once at init
        b_qkv=jnp.concatenate([bq, bk, bv]),
        w_kv=jnp.concatenate([wk, wv], axis=1),
        b_kv=jnp.concatenate([bk, bv]))


def _init_encoder_layer(key, D, dff):
    ks = jax.random.split(key, 3)
    ones, zeros = jnp.ones((D,), jnp.float32), jnp.zeros((D,), jnp.float32)
    return dict(self_attn=_init_mha(ks[0], D),
                lin1=_init_linear_params(ks[1], D, dff),
                lin2=_init_linear_params(ks[2], dff, D),
                norm1=(ones, zeros), norm2=(ones, zeros))


def _init_decoder_layer(key, D, dff):
    ks = jax.random.split(key, 4)
    ones, zeros = jnp.ones((D,), jnp.float32), jnp.zeros((D,), jnp.float32)
    return dict(self_attn=_init_mha(ks[0], D),
                cross_attn=_init_mha(ks[1], D),
                lin1=_init_linear_params(ks[2], D, dff),
                lin2=_init_linear_params(ks[3], dff, D),
                norm1=(ones, zeros), norm2=(ones, zeros), norm3=(ones, zeros))


def _init_bridge(key, in_dim, out_dim):
    # FeedForward(in_dim, 2*in_dim, out_dim) with LayerNorm(out_dim, eps=1e-6)
    ks = jax.random.split(key, 2)
    ones, zeros = jnp.ones((out_dim,), jnp.float32), jnp.zeros((out_dim,), jnp.float32)
    return dict(w1=_init_linear_params(ks[0], in_dim, 2 * in_dim),
                w2=_init_linear_params(ks[1], 2 * in_dim, out_dim),
                norm=(ones, zeros))


def _get_stack_sizes(n):
    # TODO(synk): get_n_stacks() is not provided in the spec; per the class docstring
    # (pairs of encoders/decoders around each concat-feedforward) layers are grouped
    # into stacks of 2, with a trailing stack of 1 if n is odd.
    sizes = [2] * (n // 2)
    if n % 2:
        sizes.append(1)
    return sizes


def init_model(key, D, dff, enc_num, dec_num):
    ke, kd, kw = jax.random.split(key, 3)
    enc_layer = _init_encoder_layer(ke, D, dff)
    dec_layer = _init_decoder_layer(kd, D, dff)

    remaining_encoders, remaining_decoders = [], []
    e, d = enc_num, dec_num
    if e > d:
        remaining_encoders = [enc_layer] * (e - d)   # clones() -> identical params
        e = d
    elif e < d:
        remaining_decoders = [dec_layer] * (d - e)
        d = e

    enc_sizes = _get_stack_sizes(e)
    dec_sizes = _get_stack_sizes(d)
    encoder_stacks = [[enc_layer] * n for n in enc_sizes]
    decoder_stacks = [[dec_layer] * n for n in dec_sizes]
    bridges = [_init_bridge(jax.random.fold_in(kw, i), n * D, D)
               for i, n in enumerate(enc_sizes)]

    ones, zeros = jnp.ones((D,), jnp.float32), jnp.zeros((D,), jnp.float32)
    return dict(remaining_encoders=remaining_encoders,
                remaining_decoders=remaining_decoders,
                encoder_stacks=encoder_stacks,
                decoder_stacks=decoder_stacks,
                w=bridges,
                final_norm=(ones, zeros))


# ----------------------------------------------------------------------------

if __name__ == "__main__":
    S, B, D, H = 8, 2, 32, 4
    DFF = 64                        # encoder/decoder internal FFN width
    ENC_NUM, DEC_NUM = 3, 2         # exercises the remaining_encoders trimming branch

    key = jax.random.PRNGKey(0)
    kp, ks, kt = jax.random.split(key, 3)
    params = init_model(kp, D, DFF, ENC_NUM, DEC_NUM)

    src = jax.random.normal(ks, (S, B, D), jnp.float32)
    tgt = jax.random.normal(kt, (S, B, D), jnp.float32)

    fwd = jax.jit(functools.partial(encoder_decoder_concat_fwd, nhead=H))
    out = fwd(params, src, None, None, tgt, None, None, None)
    jax.block_until_ready(out)
    assert out.shape == (S, B, D)
    assert bool(jnp.all(jnp.isfinite(out)))
    print("KERNEL_OK")
</pallas_src>

<mosaic_0001>
module attributes {stable_mosaic.version = 11 : i64} {
  func.func @_linear_kernel(%arg0: i32, %arg1: i32, %arg2: i32, %arg3: memref<16x32xf32, #tpu.memory_space<vmem>>, %arg4: memref<32x96xf32, #tpu.memory_space<vmem>>, %arg5: memref<1x96xf32, #tpu.memory_space<vmem>>, %arg6: memref<16x96xf32, #tpu.memory_space<vmem>>, %arg7: memref<16x96xf32, #tpu.memory_space<vmem>>) attributes {dimension_semantics = [#tpu.dimension_semantics<parallel>, #tpu.dimension_semantics<parallel>, #tpu.dimension_semantics<arbitrary>], iteration_bounds = array<i64: 1, 1, 1>, scalar_prefetch = 0 : i64, scratch_operands = 1 : i64, tpu.core_type = #tpu.core_type<tc>, window_params = [{transform_indices = @transform_0, window_bounds = array<i64: 16, 32>}, {transform_indices = @transform_1, window_bounds = array<i64: 32, 96>}, {transform_indices = @transform_2, window_bounds = array<i64: 1, 96>}, {transform_indices = @transform_3, window_bounds = array<i64: 16, 96>}]} {
    %c0_i32 = arith.constant 0 : i32
    %0 = arith.cmpi eq, %arg2, %c0_i32 : i32
    %1 = arith.extui %0 : i1 to i32
    %c0_i32_0 = arith.constant 0 : i32
    %2 = arith.cmpi ne, %1, %c0_i32_0 : i32
    scf.if %2 {
      %cst_10 = arith.constant 0.000000e+00 : f32
      %12 = vector.broadcast %cst_10 : f32 to vector<16x96xf32>
      %c0_11 = arith.constant 0 : index
      %c0_12 = arith.constant 0 : index
      %13 = vector.load %arg7[%c0_11, %c0_12] : memref<16x96xf32, #tpu.memory_space<vmem>>, vector<16x96xf32>
      tpu.vector_store %arg7[%c0_11, %c0_12], %12 {strides = array<i32>} : memref<16x96xf32, #tpu.memory_space<vmem>>, vector<16x96xf32>,
    } else {
    }
    %c0 = arith.constant 0 : index
    %c0_1 = arith.constant 0 : index
    %3 = vector.load %arg7[%c0, %c0_1] : memref<16x96xf32, #tpu.memory_space<vmem>>, vector<16x96xf32>
    %c0_2 = arith.constant 0 : index
    %c0_3 = arith.constant 0 : index
    %4 = vector.load %arg3[%c0_2, %c0_3] : memref<16x32xf32, #tpu.memory_space<vmem>>, vector<16x32xf32>
    %c0_4 = arith.constant 0 : index
    %c0_5 = arith.constant 0 : index
    %5 = vector.load %arg4[%c0_4, %c0_5] : memref<32x96xf32, #tpu.memory_space<vmem>>, vector<32x96xf32>
    %cst = arith.constant dense<0.000000e+00> : vector<16x96xf32>
    %6 = tpu.matmul %4, %5, %cst {dimension_numbers = #tpu.dot_dimension_numbers<[1], [0], [0], [1], [0, 0, 1, 1], [], []>} : vector<16x32xf32>, vector<32x96xf32>, vector<16x96xf32> -> vector<16x96xf32>
    %7 = arith.addf %3, %6 : vector<16x96xf32>
    %c0_6 = arith.constant 0 : index
    %c0_7 = arith.constant 0 : index
    %8 = vector.load %arg7[%c0_6, %c0_7] : memref<16x96xf32, #tpu.memory_space<vmem>>, vector<16x96xf32>
    tpu.vector_store %arg7[%c0_6, %c0_7], %7 {strides = array<i32>} : memref<16x96xf32, #tpu.memory_space<vmem>>, vector<16x96xf32>,
    %c0_i32_8 = arith.constant 0 : i32
    %9 = arith.cmpi eq, %arg2, %c0_i32_8 : i32
    %10 = arith.extui %9 : i1 to i32
    %c0_i32_9 = arith.constant 0 : i32
    %11 = arith.cmpi ne, %10, %c0_i32_9 : i32
    scf.if %11 {
      %c0_10 = arith.constant 0 : index
      %c0_11 = arith.constant 0 : index
      %12 = vector.load %arg7[%c0_10, %c0_11] : memref<16x96xf32, #tpu.memory_space<vmem>>, vector<16x96xf32>
      %c0_12 = arith.constant 0 : index
      %c0_13 = arith.constant 0 : index
      %13 = vector.load %arg5[%c0_12, %c0_13] : memref<1x96xf32, #tpu.memory_space<vmem>>, vector<1x96xf32>
      %14 = vector.broadcast %13 : vector<1x96xf32> to vector<16x96xf32>
      %15 = arith.addf %12, %14 : vector<16x96xf32>
      %c0_14 = arith.constant 0 : index
      %c0_15 = arith.constant 0 : index
      %16 = vector.load %arg6[%c0_14, %c0_15] : memref<16x96xf32, #tpu.memory_space<vmem>>, vector<16x96xf32>
      tpu.vector_store %arg6[%c0_14, %c0_15], %15 {strides = array<i32>} : memref<16x96xf32, #tpu.memory_space<vmem>>, vector<16x96xf32>,
    } else {
    }
    return
  }
  func.func @transform_0(%arg0: i32, %arg1: i32, %arg2: i32) -> (i32, i32) {
    %c0_i32 = arith.constant 0 : i32
    return %arg0, %arg2 : i32, i32
  }
  func.func @transform_1(%arg0: i32, %arg1: i32, %arg2: i32) -> (i32, i32) {
    %c0_i32 = arith.constant 0 : i32
    return %arg2, %arg1 : i32, i32
  }
  func.func @transform_2(%arg0: i32, %arg1: i32, %arg2: i32) -> (i32, i32) {
    %c0_i32 = arith.constant 0 : i32
    %c0_i32_0 = arith.constant 0 : i32
    return %c0_i32, %arg1 : i32, i32
  }
  func.func @transform_3(%arg0: i32, %arg1: i32, %arg2: i32) -> (i32, i32) {
    %c0_i32 = arith.constant 0 : i32
    return %arg0, %arg1 : i32, i32
  }
}

module attributes {stable_mosaic.version = 11 : i64} {
  func.func @_attn_kernel(%arg0: i32, %arg1: memref<1x4x8x8xf32, #tpu.memory_space<vmem>>, %arg2: memref<1x4x8x8xf32, #tpu.memory_space<vmem>>, %arg3: memref<1x4x8x8xf32, #tpu.memory_space<vmem>>, %arg4: memref<1x4x8x8xf32, #tpu.memory_space<vmem>>) attributes {dimension_semantics = [#tpu.dimension_semantics<parallel>], iteration_bounds = array<i64: 2>, scalar_prefetch = 0 : i64, scratch_operands = 0 : i64, tpu.core_type = #tpu.core_type<tc>, window_params = [{transform_indices = @transform_0, window_bounds = array<i64: 1, 4, 8, 8>}, {transform_indices = @transform_1, window_bounds = array<i64: 1, 4, 8, 8>}, {transform_indices = @transform_2, window_bounds = array<i64: 1, 4, 8, 8>}, {transform_indices = @transform_3, window_bounds = array<i64: 1, 4, 8, 8>}]} {
    %c0 = arith.constant 0 : index
    %c0_0 = arith.constant 0 : index
    %c0_1 = arith.constant 0 : index
    %c0_2 = arith.constant 0 : index
    %0 = vector.load %arg1[%c0, %c0_0, %c0_1, %c0_2] : memref<1x4x8x8xf32, #tpu.memory_space<vmem>>, vector<1x4x8x8xf32>
    %1 = vector.shape_cast %0 : vector<1x4x8x8xf32> to vector<4x8x8xf32>
    %c0_3 = arith.constant 0 : index
    %c0_4 = arith.constant 0 : index
    %c0_5 = arith.constant 0 : index
    %c0_6 = arith.constant 0 : index
    %2 = vector.load %arg2[%c0_3, %c0_4, %c0_5, %c0_6] : memref<1x4x8x8xf32, #tpu.memory_space<vmem>>, vector<1x4x8x8xf32>
    %3 = vector.shape_cast %2 : vector<1x4x8x8xf32> to vector<4x8x8xf32>
    %c0_7 = arith.constant 0 : index
    %c0_8 = arith.constant 0 : index
    %c0_9 = arith.constant 0 : index
    %c0_10 = arith.constant 0 : index
    %4 = vector.load %arg3[%c0_7, %c0_8, %c0_9, %c0_10] : memref<1x4x8x8xf32, #tpu.memory_space<vmem>>, vector<1x4x8x8xf32>
    %5 = vector.shape_cast %4 : vector<1x4x8x8xf32> to vector<4x8x8xf32>
    "tpu.trace_start"() <{level = 10 : i32, message = "hqd,hkd->hqk"}> : () -> ()
    %cst = arith.constant dense<0.000000e+00> : vector<4x8x8xf32>
    %6 = tpu.matmul %1, %3, %cst {dimension_numbers = #tpu.dot_dimension_numbers<[2], [2], [1], [1], [0, 0, 0, 1, 1, 1], [0], [0]>} : vector<4x8x8xf32>, vector<4x8x8xf32>, vector<4x8x8xf32> -> vector<4x8x8xf32>
    "tpu.trace_stop"() : () -> ()
    %cst_11 = arith.constant 0.353553385 : f32
    %7 = vector.broadcast %cst_11 : f32 to vector<4x8x8xf32>
    %8 = arith.mulf %6, %7 : vector<4x8x8xf32>
    %cst_12 = arith.constant dense<0xFF800000> : vector<4x8xf32>
    %9 = vector.multi_reduction <maximumf>, %8, %cst_12 [2] : vector<4x8x8xf32> to vector<4x8xf32>
    %10 = vector.shape_cast %9 : vector<4x8xf32> to vector<4x8x1xf32>
    %11 = vector.broadcast %10 : vector<4x8x1xf32> to vector<4x8x8xf32>
    %12 = arith.subf %8, %11 : vector<4x8x8xf32>
    %13 = math.exp %12 : vector<4x8x8xf32>
    %cst_13 = arith.constant dense<0.000000e+00> : vector<4x8xf32>
    %14 = vector.multi_reduction <add>, %13, %cst_13 [2] : vector<4x8x8xf32> to vector<4x8xf32>
    %15 = vector.shape_cast %14 : vector<4x8xf32> to vector<4x8x1xf32>
    %16 = tpu.reciprocal %15 {approx = true} : vector<4x8x1xf32> -> vector<4x8x1xf32>
    %17 = vector.broadcast %16 : vector<4x8x1xf32> to vector<4x8x8xf32>
    %18 = arith.mulf %13, %17 : vector<4x8x8xf32>
    "tpu.trace_start"() <{level = 10 : i32, message = "hqk,hkd->hqd"}> : () -> ()
    %cst_14 = arith.constant dense<0.000000e+00> : vector<4x8x8xf32>
    %19 = tpu.matmul %18, %5, %cst_14 {dimension_numbers = #tpu.dot_dimension_numbers<[2], [1], [1], [2], [0, 0, 0, 1, 1, 2], [0], [0]>} : vector<4x8x8xf32>, vector<4x8x8xf32>, vector<4x8x8xf32> -> vector<4x8x8xf32>
    "tpu.trace_stop"() : () -> ()
    %c0_15 = arith.constant 0 : index
    %c0_16 = arith.constant 0 : index
    %c0_17 = arith.constant 0 : index
    %c0_18 = arith.constant 0 : index
    %20 = vector.load %arg4[%c0_15, %c0_16, %c0_17, %c0_18] : memref<1x4x8x8xf32, #tpu.memory_space<vmem>>, vector<1x4x8x8xf32>
    %21 = vector.shape_cast %20 : vector<1x4x8x8xf32> to vector<4x8x8xf32>
    %22 = vector.shape_cast %19 : vector<4x8x8xf32> to vector<1x4x8x8xf32>
    tpu.vector_store %arg4[%c0_15, %c0_16, %c0_17, %c0_18], %22 {strides = array<i32>} : memref<1x4x8x8xf32, #tpu.memory_space<vmem>>, vector<1x4x8x8xf32>,
    return
  }
  func.func @transform_0(%arg0: i32) -> (i32, i32, i32, i32) {
    %c0_i32 = arith.constant 0 : i32
    %c0_i32_0 = arith.constant 0 : i32
    %c0_i32_1 = arith.constant 0 : i32
    %c0_i32_2 = arith.constant 0 : i32
    return %arg0, %c0_i32, %c0_i32_0, %c0_i32_1 : i32, i32, i32, i32
  }
  func.func @transform_1(%arg0: i32) -> (i32, i32, i32, i32) {
    %c0_i32 = arith.constant 0 : i32
    %c0_i32_0 = arith.constant 0 : i32
    %c0_i32_1 = arith.constant 0 : i32
    %c0_i32_2 = arith.constant 0 : i32
    return %arg0, %c0_i32, %c0_i32_0, %c0_i32_1 : i32, i32, i32, i32
  }
  func.func @transform_2(%arg0: i32) -> (i32, i32, i32, i32) {
    %c0_i32 = arith.constant 0 : i32
    %c0_i32_0 = arith.constant 0 : i32
    %c0_i32_1 = arith.constant 0 : i32
    %c0_i32_2 = arith.constant 0 : i32
    return %arg0, %c0_i32, %c0_i32_0, %c0_i32_1 : i32, i32, i32, i32
  }
  func.func @transform_3(%arg0: i32) -> (i32, i32, i32, i32) {
    %c0_i32 = arith.constant 0 : i32
    %c0_i32_0 = arith.constant 0 : i32
    %c0_i32_1 = arith.constant 0 : i32
    %c0_i32_2 = arith.constant 0 : i32
    return %arg0, %c0_i32, %c0_i32_0, %c0_i32_1 : i32, i32, i32, i32
  }
}

module attributes {stable_mosaic.version = 11 : i64} {
  func.func @_linear_kernel(%arg0: i32, %arg1: i32, %arg2: i32, %arg3: memref<16x32xf32, #tpu.memory_space<vmem>>, %arg4: memref<32x32xf32, #tpu.memory_space<vmem>>, %arg5: memref<1x32xf32, #tpu.memory_space<vmem>>, %arg6: memref<16x32xf32, #tpu.memory_space<vmem>>, %arg7: memref<16x32xf32, #tpu.memory_space<vmem>>) attributes {dimension_semantics = [#tpu.dimension_semantics<parallel>, #tpu.dimension_semantics<parallel>, #tpu.dimension_semantics<arbitrary>], iteration_bounds = array<i64: 1, 1, 1>, scalar_prefetch = 0 : i64, scratch_operands = 1 : i64, tpu.core_type = #tpu.core_type<tc>, window_params = [{transform_indices = @transform_0, window_bounds = array<i64: 16, 32>}, {transform_indices = @transform_1, window_bounds = array<i64: 32, 32>}, {transform_indices = @transform_2, window_bounds = array<i64: 1, 32>}, {transform_indices = @transform_3, window_bounds = array<i64: 16, 32>}]} {
    %c0_i32 = arith.constant 0 : i32
    %0 = arith.cmpi eq, %arg2, %c0_i32 : i32
    %1 = arith.extui %0 : i1 to i32
    %c0_i32_0 = arith.constant 0 : i32
    %2 = arith.cmpi ne, %1, %c0_i32_0 : i32
    scf.if %2 {
      %cst_10 = arith.constant 0.000000e+00 : f32
      %12 = vector.broadcast %cst_10 : f32 to vector<16x32xf32>
      %c0_11 = arith.constant 0 : index
      %c0_12 = arith.constant 0 : index
      %13 = vector.load %arg7[%c0_11, %c0_12] : memref<16x32xf32, #tpu.memory_space<vmem>>, vector<16x32xf32>
      tpu.vector_store %arg7[%c0_11, %c0_12], %12 {strides = array<i32>} : memref<16x32xf32, #tpu.memory_space<vmem>>, vector<16x32xf32>,
    } else {
    }
    %c0 = arith.constant 0 : index
    %c0_1 = arith.constant 0 : index
    %3 = vector.load %arg7[%c0, %c0_1] : memref<16x32xf32, #tpu.memory_space<vmem>>, vector<16x32xf32>
    %c0_2 = arith.constant 0 : index
    %c0_3 = arith.constant 0 : index
    %4 = vector.load %arg3[%c0_2, %c0_3] : memref<16x32xf32, #tpu.memory_space<vmem>>, vector<16x32xf32>
    %c0_4 = arith.constant 0 : index
    %c0_5 = arith.constant 0 : index
    %5 = vector.load %arg4[%c0_4, %c0_5] : memref<32x32xf32, #tpu.memory_space<vmem>>, vector<32x32xf32>
    %cst = arith.constant dense<0.000000e+00> : vector<16x32xf32>
    %6 = tpu.matmul %4, %5, %cst {dimension_numbers = #tpu.dot_dimension_numbers<[1], [0], [0], [1], [0, 0, 1, 1], [], []>} : vector<16x32xf32>, vector<32x32xf32>, vector<16x32xf32> -> vector<16x32xf32>
    %7 = arith.addf %3, %6 : vector<16x32xf32>
    %c0_6 = arith.constant 0 : index
    %c0_7 = arith.constant 0 : index
    %8 = vector.load %arg7[%c0_6, %c0_7] : memref<16x32xf32, #tpu.memory_space<vmem>>, vector<16x32xf32>
    tpu.vector_store %arg7[%c0_6, %c0_7], %7 {strides = array<i32>} : memref<16x32xf32, #tpu.memory_space<vmem>>, vector<16x32xf32>,
    %c0_i32_8 = arith.constant 0 : i32
    %9 = arith.cmpi eq, %arg2, %c0_i32_8 : i32
    %10 = arith.extui %9 : i1 to i32
    %c0_i32_9 = arith.constant 0 : i32
    %11 = arith.cmpi ne, %10, %c0_i32_9 : i32
    scf.if %11 {
      %c0_10 = arith.constant 0 : index
      %c0_11 = arith.constant 0 : index
      %12 = vector.load %arg7[%c0_10, %c0_11] : memref<16x32xf32, #tpu.memory_space<vmem>>, vector<16x32xf32>
      %c0_12 = arith.constant 0 : index
      %c0_13 = arith.constant 0 : index
      %13 = vector.load %arg5[%c0_12, %c0_13] : memref<1x32xf32, #tpu.memory_space<vmem>>, vector<1x32xf32>
      %14 = vector.broadcast %13 : vector<1x32xf32> to vector<16x32xf32>
      %15 = arith.addf %12, %14 : vector<16x32xf32>
      %c0_14 = arith.constant 0 : index
      %c0_15 = arith.constant 0 : index
      %16 = vector.load %arg6[%c0_14, %c0_15] : memref<16x32xf32, #tpu.memory_space<vmem>>, vector<16x32xf32>
      tpu.vector_store %arg6[%c0_14, %c0_15], %15 {strides = array<i32>} : memref<16x32xf32, #tpu.memory_space<vmem>>, vector<16x32xf32>,
    } else {
    }
    return
  }
  func.func @transform_0(%arg0: i32, %arg1: i32, %arg2: i32) -> (i32, i32) {
    %c0_i32 = arith.constant 0 : i32
    return %arg0, %arg2 : i32, i32
  }
  func.func @transform_1(%arg0: i32, %arg1: i32, %arg2: i32) -> (i32, i32) {
    %c0_i32 = arith.constant 0 : i32
    return %arg2, %arg1 : i32, i32
  }
  func.func @transform_2(%arg0: i32, %arg1: i32, %arg2: i32) -> (i32, i32) {
    %c0_i32 = arith.constant 0 : i32
    %c0_i32_0 = arith.constant 0 : i32
    return %c0_i32, %arg1 : i32, i32
  }
  func.func @transform_3(%arg0: i32, %arg1: i32, %arg2: i32) -> (i32, i32) {
    %c0_i32 = arith.constant 0 : i32
    return %arg0, %arg1 : i32, i32
  }
}

module attributes {stable_mosaic.version = 11 : i64} {
  func.func @_add_ln_kernel(%arg0: i32, %arg1: memref<16x32xf32, #tpu.memory_space<vmem>>, %arg2: memref<16x32xf32, #tpu.memory_space<vmem>>, %arg3: memref<1x32xf32, #tpu.memory_space<vmem>>, %arg4: memref<1x32xf32, #tpu.memory_space<vmem>>, %arg5: memref<16x32xf32, #tpu.memory_space<vmem>>) attributes {dimension_semantics = [#tpu.dimension_semantics<parallel>], iteration_bounds = array<i64: 1>, scalar_prefetch = 0 : i64, scratch_operands = 0 : i64, tpu.core_type = #tpu.core_type<tc>, window_params = [{transform_indices = @transform_0, window_bounds = array<i64: 16, 32>}, {transform_indices = @transform_1, window_bounds = array<i64: 16, 32>}, {pipeline_mode = #tpu.pipeline_mode<synchronous>, transform_indices = @transform_2, window_bounds = array<i64: 1, 32>}, {pipeline_mode = #tpu.pipeline_mode<synchronous>, transform_indices = @transform_3, window_bounds = array<i64: 1, 32>}, {transform_indices = @transform_4, window_bounds = array<i64: 16, 32>}]} {
    %c0 = arith.constant 0 : index
    %c0_0 = arith.constant 0 : index
    %0 = vector.load %arg1[%c0, %c0_0] : memref<16x32xf32, #tpu.memory_space<vmem>>, vector<16x32xf32>
    %c0_1 = arith.constant 0 : index
    %c0_2 = arith.constant 0 : index
    %1 = vector.load %arg2[%c0_1, %c0_2] : memref<16x32xf32, #tpu.memory_space<vmem>>, vector<16x32xf32>
    %2 = arith.addf %0, %1 : vector<16x32xf32>
    %c0_3 = arith.constant 0 : index
    %c0_4 = arith.constant 0 : index
    %3 = vector.load %arg3[%c0_3, %c0_4] : memref<1x32xf32, #tpu.memory_space<vmem>>, vector<1x32xf32>
    %c0_5 = arith.constant 0 : index
    %c0_6 = arith.constant 0 : index
    %4 = vector.load %arg4[%c0_5, %c0_6] : memref<1x32xf32, #tpu.memory_space<vmem>>, vector<1x32xf32>
    %cst = arith.constant dense<0.000000e+00> : vector<16xf32>
    %5 = vector.multi_reduction <add>, %2, %cst [1] : vector<16x32xf32> to vector<16xf32>
    %6 = vector.shape_cast %5 : vector<16xf32> to vector<16x1xf32>
    %cst_7 = arith.constant 3.200000e+01 : f32
    %7 = vector.broadcast %cst_7 : f32 to vector<16x1xf32>
    %8 = arith.divf %6, %7 : vector<16x1xf32>
    %9 = vector.broadcast %8 : vector<16x1xf32> to vector<16x32xf32>
    %10 = arith.subf %2, %9 : vector<16x32xf32>
    %11 = arith.mulf %10, %10 : vector<16x32xf32>
    %cst_8 = arith.constant dense<0.000000e+00> : vector<16xf32>
    %12 = vector.multi_reduction <add>, %11, %cst_8 [1] : vector<16x32xf32> to vector<16xf32>
    %13 = vector.shape_cast %12 : vector<16xf32> to vector<16x1xf32>
    %cst_9 = arith.constant 3.200000e+01 : f32
    %14 = vector.broadcast %cst_9 : f32 to vector<16x1xf32>
    %15 = arith.divf %13, %14 : vector<16x1xf32>
    %cst_10 = arith.constant 9.99999974E-6 : f32
    %16 = vector.broadcast %cst_10 : f32 to vector<16x1xf32>
    %17 = arith.addf %15, %16 : vector<16x1xf32>
    %18 = math.rsqrt %17 : vector<16x1xf32>
    %19 = vector.broadcast %18 : vector<16x1xf32> to vector<16x32xf32>
    %20 = arith.mulf %10, %19 : vector<16x32xf32>
    %21 = vector.broadcast %3 : vector<1x32xf32> to vector<16x32xf32>
    %22 = arith.mulf %20, %21 : vector<16x32xf32>
    %23 = vector.broadcast %4 : vector<1x32xf32> to vector<16x32xf32>
    %24 = arith.addf %22, %23 : vector<16x32xf32>
    %c0_11 = arith.constant 0 : index
    %c0_12 = arith.constant 0 : index
    %25 = vector.load %arg5[%c0_11, %c0_12] : memref<16x32xf32, #tpu.memory_space<vmem>>, vector<16x32xf32>
    tpu.vector_store %arg5[%c0_11, %c0_12], %24 {strides = array<i32>} : memref<16x32xf32, #tpu.memory_space<vmem>>, vector<16x32xf32>,
    return
  }
  func.func @transform_0(%arg0: i32) -> (i32, i32) {
    %c0_i32 = arith.constant 0 : i32
    %c0_i32_0 = arith.constant 0 : i32
    return %arg0, %c0_i32 : i32, i32
  }
  func.func @transform_1(%arg0: i32) -> (i32, i32) {
    %c0_i32 = arith.constant 0 : i32
    %c0_i32_0 = arith.constant 0 : i32
    return %arg0, %c0_i32 : i32, i32
  }
  func.func @transform_2(%arg0: i32) -> (i32, i32) {
    %c0_i32 = arith.constant 0 : i32
    %c0_i32_0 = arith.constant 0 : i32
    %c0_i32_1 = arith.constant 0 : i32
    return %c0_i32, %c0_i32_0 : i32, i32
  }
  func.func @transform_3(%arg0: i32) -> (i32, i32) {
    %c0_i32 = arith.constant 0 : i32
    %c0_i32_0 = arith.constant 0 : i32
    %c0_i32_1 = arith.constant 0 : i32
    return %c0_i32, %c0_i32_0 : i32, i32
  }
  func.func @transform_4(%arg0: i32) -> (i32, i32) {
    %c0_i32 = arith.constant 0 : i32
    %c0_i32_0 = arith.constant 0 : i32
    return %arg0, %c0_i32 : i32, i32
  }
}

module attributes {stable_mosaic.version = 11 : i64} {
  func.func @_linear_kernel(%arg0: i32, %arg1: i32, %arg2: i32, %arg3: memref<16x32xf32, #tpu.memory_space<vmem>>, %arg4: memref<32x64xf32, #tpu.memory_space<vmem>>, %arg5: memref<1x64xf32, #tpu.memory_space<vmem>>, %arg6: memref<16x64xf32, #tpu.memory_space<vmem>>, %arg7: memref<16x64xf32, #tpu.memory_space<vmem>>) attributes {dimension_semantics = [#tpu.dimension_semantics<parallel>, #tpu.dimension_semantics<parallel>, #tpu.dimension_semantics<arbitrary>], iteration_bounds = array<i64: 1, 1, 1>, scalar_prefetch = 0 : i64, scratch_operands = 1 : i64, tpu.core_type = #tpu.core_type<tc>, window_params = [{transform_indices = @transform_0, window_bounds = array<i64: 16, 32>}, {transform_indices = @transform_1, window_bounds = array<i64: 32, 64>}, {transform_indices = @transform_2, window_bounds = array<i64: 1, 64>}, {transform_indices = @transform_3, window_bounds = array<i64: 16, 64>}]} {
    %c0_i32 = arith.constant 0 : i32
    %0 = arith.cmpi eq, %arg2, %c0_i32 : i32
    %1 = arith.extui %0 : i1 to i32
    %c0_i32_0 = arith.constant 0 : i32
    %2 = arith.cmpi ne, %1, %c0_i32_0 : i32
    scf.if %2 {
      %cst_10 = arith.constant 0.000000e+00 : f32
      %12 = vector.broadcast %cst_10 : f32 to vector<16x64xf32>
      %c0_11 = arith.constant 0 : index
      %c0_12 = arith.constant 0 : index
      %13 = vector.load %arg7[%c0_11, %c0_12] : memref<16x64xf32, #tpu.memory_space<vmem>>, vector<16x64xf32>
      tpu.vector_store %arg7[%c0_11, %c0_12], %12 {strides = array<i32>} : memref<16x64xf32, #tpu.memory_space<vmem>>, vector<16x64xf32>,
    } else {
    }
    %c0 = arith.constant 0 : index
    %c0_1 = arith.constant 0 : index
    %3 = vector.load %arg7[%c0, %c0_1] : memref<16x64xf32, #tpu.memory_space<vmem>>, vector<16x64xf32>
    %c0_2 = arith.constant 0 : index
    %c0_3 = arith.constant 0 : index
    %4 = vector.load %arg3[%c0_2, %c0_3] : memref<16x32xf32, #tpu.memory_space<vmem>>, vector<16x32xf32>
    %c0_4 = arith.constant 0 : index
    %c0_5 = arith.constant 0 : index
    %5 = vector.load %arg4[%c0_4, %c0_5] : memref<32x64xf32, #tpu.memory_space<vmem>>, vector<32x64xf32>
    %cst = arith.constant dense<0.000000e+00> : vector<16x64xf32>
    %6 = tpu.matmul %4, %5, %cst {dimension_numbers = #tpu.dot_dimension_numbers<[1], [0], [0], [1], [0, 0, 1, 1], [], []>} : vector<16x32xf32>, vector<32x64xf32>, vector<16x64xf32> -> vector<16x64xf32>
    %7 = arith.addf %3, %6 : vector<16x64xf32>
    %c0_6 = arith.constant 0 : index
    %c0_7 = arith.constant 0 : index
    %8 = vector.load %arg7[%c0_6, %c0_7] : memref<16x64xf32, #tpu.memory_space<vmem>>, vector<16x64xf32>
    tpu.vector_store %arg7[%c0_6, %c0_7], %7 {strides = array<i32>} : memref<16x64xf32, #tpu.memory_space<vmem>>, vector<16x64xf32>,
    %c0_i32_8 = arith.constant 0 : i32
    %9 = arith.cmpi eq, %arg2, %c0_i32_8 : i32
    %10 = arith.extui %9 : i1 to i32
    %c0_i32_9 = arith.constant 0 : i32
    %11 = arith.cmpi ne, %10, %c0_i32_9 : i32
    scf.if %11 {
      %c0_10 = arith.constant 0 : index
      %c0_11 = arith.constant 0 : index
      %12 = vector.load %arg7[%c0_10, %c0_11] : memref<16x64xf32, #tpu.memory_space<vmem>>, vector<16x64xf32>
      %c0_12 = arith.constant 0 : index
      %c0_13 = arith.constant 0 : index
      %13 = vector.load %arg5[%c0_12, %c0_13] : memref<1x64xf32, #tpu.memory_space<vmem>>, vector<1x64xf32>
      %14 = vector.broadcast %13 : vector<1x64xf32> to vector<16x64xf32>
      %15 = arith.addf %12, %14 : vector<16x64xf32>
      %cst_14 = arith.constant 0.000000e+00 : f32
      %16 = vector.broadcast %cst_14 : f32 to vector<16x64xf32>
      %17 = arith.maximumf %15, %16 : vector<16x64xf32>
      %c0_15 = arith.constant 0 : index
      %c0_16 = arith.constant 0 : index
      %18 = vector.load %arg6[%c0_15, %c0_16] : memref<16x64xf32, #tpu.memory_space<vmem>>, vector<16x64xf32>
      tpu.vector_store %arg6[%c0_15, %c0_16], %17 {strides = array<i32>} : memref<16x64xf32, #tpu.memory_space<vmem>>, vector<16x64xf32>,
    } else {
    }
    return
  }
  func.func @transform_0(%arg0: i32, %arg1: i32, %arg2: i32) -> (i32, i32) {
    %c0_i32 = arith.constant 0 : i32
    return %arg0, %arg2 : i32, i32
  }
  func.func @transform_1(%arg0: i32, %arg1: i32, %arg2: i32) -> (i32, i32) {
    %c0_i32 = arith.constant 0 : i32
    return %arg2, %arg1 : i32, i32
  }
  func.func @transform_2(%arg0: i32, %arg1: i32, %arg2: i32) -> (i32, i32) {
    %c0_i32 = arith.constant 0 : i32
    %c0_i32_0 = arith.constant 0 : i32
    return %c0_i32, %arg1 : i32, i32
  }
  func.func @transform_3(%arg0: i32, %arg1: i32, %arg2: i32) -> (i32, i32) {
    %c0_i32 = arith.constant 0 : i32
    return %arg0, %arg1 : i32, i32
  }
}

module attributes {stable_mosaic.version = 11 : i64} {
  func.func @_linear_kernel(%arg0: i32, %arg1: i32, %arg2: i32, %arg3: memref<16x64xf32, #tpu.memory_space<vmem>>, %arg4: memref<64x32xf32, #tpu.memory_space<vmem>>, %arg5: memref<1x32xf32, #tpu.memory_space<vmem>>, %arg6: memref<16x32xf32, #tpu.memory_space<vmem>>, %arg7: memref<16x32xf32, #tpu.memory_space<vmem>>) attributes {dimension_semantics = [#tpu.dimension_semantics<parallel>, #tpu.dimension_semantics<parallel>, #tpu.dimension_semantics<arbitrary>], iteration_bounds = array<i64: 1, 1, 1>, scalar_prefetch = 0 : i64, scratch_operands = 1 : i64, tpu.core_type = #tpu.core_type<tc>, window_params = [{transform_indices = @transform_0, window_bounds = array<i64: 16, 64>}, {transform_indices = @transform_1, window_bounds = array<i64: 64, 32>}, {transform_indices = @transform_2, window_bounds = array<i64: 1, 32>}, {transform_indices = @transform_3, window_bounds = array<i64: 16, 32>}]} {
    %c0_i32 = arith.constant 0 : i32
    %0 = arith.cmpi eq, %arg2, %c0_i32 : i32
    %1 = arith.extui %0 : i1 to i32
    %c0_i32_0 = arith.constant 0 : i32
    %2 = arith.cmpi ne, %1, %c0_i32_0 : i32
    scf.if %2 {
      %cst_10 = arith.constant 0.000000e+00 : f32
      %12 = vector.broadcast %cst_10 : f32 to vector<16x32xf32>
      %c0_11 = arith.constant 0 : index
      %c0_12 = arith.constant 0 : index
      %13 = vector.load %arg7[%c0_11, %c0_12] : memref<16x32xf32, #tpu.memory_space<vmem>>, vector<16x32xf32>
      tpu.vector_store %arg7[%c0_11, %c0_12], %12 {strides = array<i32>} : memref<16x32xf32, #tpu.memory_space<vmem>>, vector<16x32xf32>,
    } else {
    }
    %c0 = arith.constant 0 : index
    %c0_1 = arith.constant 0 : index
    %3 = vector.load %arg7[%c0, %c0_1] : memref<16x32xf32, #tpu.memory_space<vmem>>, vector<16x32xf32>
    %c0_2 = arith.constant 0 : index
    %c0_3 = arith.constant 0 : index
    %4 = vector.load %arg3[%c0_2, %c0_3] : memref<16x64xf32, #tpu.memory_space<vmem>>, vector<16x64xf32>
    %c0_4 = arith.constant 0 : index
    %c0_5 = arith.constant 0 : index
    %5 = vector.load %arg4[%c0_4, %c0_5] : memref<64x32xf32, #tpu.memory_space<vmem>>, vector<64x32xf32>
    %cst = arith.constant dense<0.000000e+00> : vector<16x32xf32>
    %6 = tpu.matmul %4, %5, %cst {dimension_numbers = #tpu.dot_dimension_numbers<[1], [0], [0], [1], [0, 0, 1, 1], [], []>} : vector<16x64xf32>, vector<64x32xf32>, vector<16x32xf32> -> vector<16x32xf32>
    %7 = arith.addf %3, %6 : vector<16x32xf32>
    %c0_6 = arith.constant 0 : index
    %c0_7 = arith.constant 0 : index
    %8 = vector.load %arg7[%c0_6, %c0_7] : memref<16x32xf32, #tpu.memory_space<vmem>>, vector<16x32xf32>
    tpu.vector_store %arg7[%c0_6, %c0_7], %7 {strides = array<i32>} : memref<16x32xf32, #tpu.memory_space<vmem>>, vector<16x32xf32>,
    %c0_i32_8 = arith.constant 0 : i32
    %9 = arith.cmpi eq, %arg2, %c0_i32_8 : i32
    %10 = arith.extui %9 : i1 to i32
    %c0_i32_9 = arith.constant 0 : i32
    %11 = arith.cmpi ne, %10, %c0_i32_9 : i32
    scf.if %11 {
      %c0_10 = arith.constant 0 : index
      %c0_11 = arith.constant 0 : index
      %12 = vector.load %arg7[%c0_10, %c0_11] : memref<16x32xf32, #tpu.memory_space<vmem>>, vector<16x32xf32>
      %c0_12 = arith.constant 0 : index
      %c0_13 = arith.constant 0 : index
      %13 = vector.load %arg5[%c0_12, %c0_13] : memref<1x32xf32, #tpu.memory_space<vmem>>, vector<1x32xf32>
      %14 = vector.broadcast %13 : vector<1x32xf32> to vector<16x32xf32>
      %15 = arith.addf %12, %14 : vector<16x32xf32>
      %c0_14 = arith.constant 0 : index
      %c0_15 = arith.constant 0 : index
      %16 = vector.load %arg6[%c0_14, %c0_15] : memref<16x32xf32, #tpu.memory_space<vmem>>, vector<16x32xf32>
      tpu.vector_store %arg6[%c0_14, %c0_15], %15 {strides = array<i32>} : memref<16x32xf32, #tpu.memory_space<vmem>>, vector<16x32xf32>,
    } else {
    }
    return
  }
  func.func @transform_0(%arg0: i32, %arg1: i32, %arg2: i32) -> (i32, i32) {
    %c0_i32 = arith.constant 0 : i32
    return %arg0, %arg2 : i32, i32
  }
  func.func @transform_1(%arg0: i32, %arg1: i32, %arg2: i32) -> (i32, i32) {
    %c0_i32 = arith.constant 0 : i32
    return %arg2, %arg1 : i32, i32
  }
  func.func @transform_2(%arg0: i32, %arg1: i32, %arg2: i32) -> (i32, i32) {
    %c0_i32 = arith.constant 0 : i32
    %c0_i32_0 = arith.constant 0 : i32
    return %c0_i32, %arg1 : i32, i32
  }
  func.func @transform_3(%arg0: i32, %arg1: i32, %arg2: i32) -> (i32, i32) {
    %c0_i32 = arith.constant 0 : i32
    return %arg0, %arg1 : i32, i32
  }
}

module attributes {stable_mosaic.version = 11 : i64} {
  func.func @_linear_kernel(%arg0: i32, %arg1: i32, %arg2: i32, %arg3: memref<16x128xf32, #tpu.memory_space<vmem>>, %arg4: memref<128x32xf32, #tpu.memory_space<vmem>>, %arg5: memref<1x32xf32, #tpu.memory_space<vmem>>, %arg6: memref<16x32xf32, #tpu.memory_space<vmem>>, %arg7: memref<16x32xf32, #tpu.memory_space<vmem>>) attributes {dimension_semantics = [#tpu.dimension_semantics<parallel>, #tpu.dimension_semantics<parallel>, #tpu.dimension_semantics<arbitrary>], iteration_bounds = array<i64: 1, 1, 1>, scalar_prefetch = 0 : i64, scratch_operands = 1 : i64, tpu.core_type = #tpu.core_type<tc>, window_params = [{transform_indices = @transform_0, window_bounds = array<i64: 16, 128>}, {transform_indices = @transform_1, window_bounds = array<i64: 128, 32>}, {transform_indices = @transform_2, window_bounds = array<i64: 1, 32>}, {transform_indices = @transform_3, window_bounds = array<i64: 16, 32>}]} {
    %c0_i32 = arith.constant 0 : i32
    %0 = arith.cmpi eq, %arg2, %c0_i32 : i32
    %1 = arith.extui %0 : i1 to i32
    %c0_i32_0 = arith.constant 0 : i32
    %2 = arith.cmpi ne, %1, %c0_i32_0 : i32
    scf.if %2 {
      %cst_10 = arith.constant 0.000000e+00 : f32
      %12 = vector.broadcast %cst_10 : f32 to vector<16x32xf32>
      %c0_11 = arith.constant 0 : index
      %c0_12 = arith.constant 0 : index
      %13 = vector.load %arg7[%c0_11, %c0_12] : memref<16x32xf32, #tpu.memory_space<vmem>>, vector<16x32xf32>
      tpu.vector_store %arg7[%c0_11, %c0_12], %12 {strides = array<i32>} : memref<16x32xf32, #tpu.memory_space<vmem>>, vector<16x32xf32>,
    } else {
    }
    %c0 = arith.constant 0 : index
    %c0_1 = arith.constant 0 : index
    %3 = vector.load %arg7[%c0, %c0_1] : memref<16x32xf32, #tpu.memory_space<vmem>>, vector<16x32xf32>
    %c0_2 = arith.constant 0 : index
    %c0_3 = arith.constant 0 : index
    %4 = vector.load %arg3[%c0_2, %c0_3] : memref<16x128xf32, #tpu.memory_space<vmem>>, vector<16x128xf32>
    %c0_4 = arith.constant 0 : index
    %c0_5 = arith.constant 0 : index
    %5 = vector.load %arg4[%c0_4, %c0_5] : memref<128x32xf32, #tpu.memory_space<vmem>>, vector<128x32xf32>
    %cst = arith.constant dense<0.000000e+00> : vector<16x32xf32>
    %6 = tpu.matmul %4, %5, %cst {dimension_numbers = #tpu.dot_dimension_numbers<[1], [0], [0], [1], [0, 0, 1, 1], [], []>} : vector<16x128xf32>, vector<128x32xf32>, vector<16x32xf32> -> vector<16x32xf32>
    %7 = arith.addf %3, %6 : vector<16x32xf32>
    %c0_6 = arith.constant 0 : index
    %c0_7 = arith.constant 0 : index
    %8 = vector.load %arg7[%c0_6, %c0_7] : memref<16x32xf32, #tpu.memory_space<vmem>>, vector<16x32xf32>
    tpu.vector_store %arg7[%c0_6, %c0_7], %7 {strides = array<i32>} : memref<16x32xf32, #tpu.memory_space<vmem>>, vector<16x32xf32>,
    %c0_i32_8 = arith.constant 0 : i32
    %9 = arith.cmpi eq, %arg2, %c0_i32_8 : i32
    %10 = arith.extui %9 : i1 to i32
    %c0_i32_9 = arith.constant 0 : i32
    %11 = arith.cmpi ne, %10, %c0_i32_9 : i32
    scf.if %11 {
      %c0_10 = arith.constant 0 : index
      %c0_11 = arith.constant 0 : index
      %12 = vector.load %arg7[%c0_10, %c0_11] : memref<16x32xf32, #tpu.memory_space<vmem>>, vector<16x32xf32>
      %c0_12 = arith.constant 0 : index
      %c0_13 = arith.constant 0 : index
      %13 = vector.load %arg5[%c0_12, %c0_13] : memref<1x32xf32, #tpu.memory_space<vmem>>, vector<1x32xf32>
      %14 = vector.broadcast %13 : vector<1x32xf32> to vector<16x32xf32>
      %15 = arith.addf %12, %14 : vector<16x32xf32>
      %c0_14 = arith.constant 0 : index
      %c0_15 = arith.constant 0 : index
      %16 = vector.load %arg6[%c0_14, %c0_15] : memref<16x32xf32, #tpu.memory_space<vmem>>, vector<16x32xf32>
      tpu.vector_store %arg6[%c0_14, %c0_15], %15 {strides = array<i32>} : memref<16x32xf32, #tpu.memory_space<vmem>>, vector<16x32xf32>,
    } else {
    }
    return
  }
  func.func @transform_0(%arg0: i32, %arg1: i32, %arg2: i32) -> (i32, i32) {
    %c0_i32 = arith.constant 0 : i32
    return %arg0, %arg2 : i32, i32
  }
  func.func @transform_1(%arg0: i32, %arg1: i32, %arg2: i32) -> (i32, i32) {
    %c0_i32 = arith.constant 0 : i32
    return %arg2, %arg1 : i32, i32
  }
  func.func @transform_2(%arg0: i32, %arg1: i32, %arg2: i32) -> (i32, i32) {
    %c0_i32 = arith.constant 0 : i32
    %c0_i32_0 = arith.constant 0 : i32
    return %c0_i32, %arg1 : i32, i32
  }
  func.func @transform_3(%arg0: i32, %arg1: i32, %arg2: i32) -> (i32, i32) {
    %c0_i32 = arith.constant 0 : i32
    return %arg0, %arg1 : i32, i32
  }
}

module attributes {stable_mosaic.version = 11 : i64} {
  func.func @_linear_kernel(%arg0: i32, %arg1: i32, %arg2: i32, %arg3: memref<16x64xf32, #tpu.memory_space<vmem>>, %arg4: memref<64x128xf32, #tpu.memory_space<vmem>>, %arg5: memref<1x128xf32, #tpu.memory_space<vmem>>, %arg6: memref<16x128xf32, #tpu.memory_space<vmem>>, %arg7: memref<16x128xf32, #tpu.memory_space<vmem>>) attributes {dimension_semantics = [#tpu.dimension_semantics<parallel>, #tpu.dimension_semantics<parallel>, #tpu.dimension_semantics<arbitrary>], iteration_bounds = array<i64: 1, 1, 1>, scalar_prefetch = 0 : i64, scratch_operands = 1 : i64, tpu.core_type = #tpu.core_type<tc>, window_params = [{transform_indices = @transform_0, window_bounds = array<i64: 16, 64>}, {transform_indices = @transform_1, window_bounds = array<i64: 64, 128>}, {transform_indices = @transform_2, window_bounds = array<i64: 1, 128>}, {transform_indices = @transform_3, window_bounds = array<i64: 16, 128>}]} {
    %c0_i32 = arith.constant 0 : i32
    %0 = arith.cmpi eq, %arg2, %c0_i32 : i32
    %1 = arith.extui %0 : i1 to i32
    %c0_i32_0 = arith.constant 0 : i32
    %2 = arith.cmpi ne, %1, %c0_i32_0 : i32
    scf.if %2 {
      %cst_10 = arith.constant 0.000000e+00 : f32
      %12 = vector.broadcast %cst_10 : f32 to vector<16x128xf32>
      %c0_11 = arith.constant 0 : index
      %c0_12 = arith.constant 0 : index
      %13 = vector.load %arg7[%c0_11, %c0_12] : memref<16x128xf32, #tpu.memory_space<vmem>>, vector<16x128xf32>
      tpu.vector_store %arg7[%c0_11, %c0_12], %12 {strides = array<i32>} : memref<16x128xf32, #tpu.memory_space<vmem>>, vector<16x128xf32>,
    } else {
    }
    %c0 = arith.constant 0 : index
    %c0_1 = arith.constant 0 : index
    %3 = vector.load %arg7[%c0, %c0_1] : memref<16x128xf32, #tpu.memory_space<vmem>>, vector<16x128xf32>
    %c0_2 = arith.constant 0 : index
    %c0_3 = arith.constant 0 : index
    %4 = vector.load %arg3[%c0_2, %c0_3] : memref<16x64xf32, #tpu.memory_space<vmem>>, vector<16x64xf32>
    %c0_4 = arith.constant 0 : index
    %c0_5 = arith.constant 0 : index
    %5 = vector.load %arg4[%c0_4, %c0_5] : memref<64x128xf32, #tpu.memory_space<vmem>>, vector<64x128xf32>
    %cst = arith.constant dense<0.000000e+00> : vector<16x128xf32>
    %6 = tpu.matmul %4, %5, %cst {dimension_numbers = #tpu.dot_dimension_numbers<[1], [0], [0], [1], [0, 0, 1, 1], [], []>} : vector<16x64xf32>, vector<64x128xf32>, vector<16x128xf32> -> vector<16x128xf32>
    %7 = arith.addf %3, %6 : vector<16x128xf32>
    %c0_6 = arith.constant 0 : index
    %c0_7 = arith.constant 0 : index
    %8 = vector.load %arg7[%c0_6, %c0_7] : memref<16x128xf32, #tpu.memory_space<vmem>>, vector<16x128xf32>
    tpu.vector_store %arg7[%c0_6, %c0_7], %7 {strides = array<i32>} : memref<16x128xf32, #tpu.memory_space<vmem>>, vector<16x128xf32>,
    %c0_i32_8 = arith.constant 0 : i32
    %9 = arith.cmpi eq, %arg2, %c0_i32_8 : i32
    %10 = arith.extui %9 : i1 to i32
    %c0_i32_9 = arith.constant 0 : i32
    %11 = arith.cmpi ne, %10, %c0_i32_9 : i32
    scf.if %11 {
      %c0_10 = arith.constant 0 : index
      %c0_11 = arith.constant 0 : index
      %12 = vector.load %arg7[%c0_10, %c0_11] : memref<16x128xf32, #tpu.memory_space<vmem>>, vector<16x128xf32>
      %c0_12 = arith.constant 0 : index
      %c0_13 = arith.constant 0 : index
      %13 = vector.load %arg5[%c0_12, %c0_13] : memref<1x128xf32, #tpu.memory_space<vmem>>, vector<1x128xf32>
      %14 = vector.broadcast %13 : vector<1x128xf32> to vector<16x128xf32>
      %15 = arith.addf %12, %14 : vector<16x128xf32>
      %cst_14 = arith.constant 5.000000e-01 : f32
      %16 = vector.broadcast %cst_14 : f32 to vector<16x128xf32>
      %17 = arith.mulf %16, %15 : vector<16x128xf32>
      %cst_15 = arith.constant 0.707106769 : f32
      %18 = vector.broadcast %cst_15 : f32 to vector<16x128xf32>
      %19 = arith.mulf %15, %18 : vector<16x128xf32>
      %cst_16 = arith.constant 0.000000e+00 : f32
      %20 = vector.broadcast %cst_16 : f32 to vector<16x128xf32>
      %21 = arith.cmpf oge, %19, %20 : vector<16x128xf32>
      %cst_17 = arith.constant 1.000000e+00 : f32
      %cst_18 = arith.constant -1.000000e+00 : f32
      %22 = vector.broadcast %cst_17 : f32 to vector<16x128xf32>
      %23 = vector.broadcast %cst_18 : f32 to vector<16x128xf32>
      %24 = arith.select %21, %22, %23 : vector<16x128xi1>, vector<16x128xf32>
      %25 = math.absf %19 : vector<16x128xf32>
      %cst_19 = arith.constant 0.327591091 : f32
      %26 = vector.broadcast %cst_19 : f32 to vector<16x128xf32>
      %27 = arith.mulf %26, %25 : vector<16x128xf32>
      %cst_20 = arith.constant 1.000000e+00 : f32
      %28 = vector.broadcast %cst_20 : f32 to vector<16x128xf32>
      %29 = arith.addf %28, %27 : vector<16x128xf32>
      %cst_21 = arith.constant 1.000000e+00 : f32
      %30 = vector.broadcast %cst_21 : f32 to vector<16x128xf32>
      %31 = arith.divf %30, %29 : vector<16x128xf32>
      %cst_22 = arith.constant 1.06140542 : f32
      %32 = vector.broadcast %cst_22 : f32 to vector<16x128xf32>
      %33 = arith.mulf %32, %31 : vector<16x128xf32>
      %cst_23 = arith.constant -1.45315206 : f32
      %34 = vector.broadcast %cst_23 : f32 to vector<16x128xf32>
      %35 = arith.addf %33, %34 : vector<16x128xf32>
      %36 = arith.mulf %35, %31 : vector<16x128xf32>
      %cst_24 = arith.constant 1.42141378 : f32
      %37 = vector.broadcast %cst_24 : f32 to vector<16x128xf32>
      %38 = arith.addf %36, %37 : vector<16x128xf32>
      %39 = arith.mulf %38, %31 : vector<16x128xf32>
      %cst_25 = arith.constant -0.284496725 : f32
      %40 = vector.broadcast %cst_25 : f32 to vector<16x128xf32>
      %41 = arith.addf %39, %40 : vector<16x128xf32>
      %42 = arith.mulf %41, %31 : vector<16x128xf32>
      %cst_26 = arith.constant 0.254829586 : f32
      %43 = vector.broadcast %cst_26 : f32 to vector<16x128xf32>
      %44 = arith.addf %42, %43 : vector<16x128xf32>
      %45 = arith.mulf %44, %31 : vector<16x128xf32>
      %cst_27 = arith.constant 0.000000e+00 : f32
      %46 = vector.broadcast %cst_27 : f32 to vector<16x128xf32>
      %47 = arith.subf %46, %25 : vector<16x128xf32>
      %48 = arith.mulf %47, %25 : vector<16x128xf32>
      %49 = math.exp %48 : vector<16x128xf32>
      %50 = arith.mulf %45, %49 : vector<16x128xf32>
      %cst_28 = arith.constant 1.000000e+00 : f32
      %51 = vector.broadcast %cst_28 : f32 to vector<16x128xf32>
      %52 = arith.subf %51, %50 : vector<16x128xf32>
      %53 = arith.mulf %24, %52 : vector<16x128xf32>
      %cst_29 = arith.constant 1.000000e+00 : f32
      %54 = vector.broadcast %cst_29 : f32 to vector<16x128xf32>
      %55 = arith.addf %54, %53 : vector<16x128xf32>
      %56 = arith.mulf %17, %55 : vector<16x128xf32>
      %c0_30 = arith.constant 0 : index
      %c0_31 = arith.constant 0 : index
      %57 = vector.load %arg6[%c0_30, %c0_31] : memref<16x128xf32, #tpu.memory_space<vmem>>, vector<16x128xf32>
      tpu.vector_store %arg6[%c0_30, %c0_31], %56 {strides = array<i32>} : memref<16x128xf32, #tpu.memory_space<vmem>>, vector<16x128xf32>,
    } else {
    }
    return
  }
  func.func @transform_0(%arg0: i32, %arg1: i32, %arg2: i32) -> (i32, i32) {
    %c0_i32 = arith.constant 0 : i32
    return %arg0, %arg2 : i32, i32
  }
  func.func @transform_1(%arg0: i32, %arg1: i32, %arg2: i32) -> (i32, i32) {
    %c0_i32 = arith.constant 0 : i32
    return %arg2, %arg1 : i32, i32
  }
  func.func @transform_2(%arg0: i32, %arg1: i32, %arg2: i32) -> (i32, i32) {
    %c0_i32 = arith.constant 0 : i32
    %c0_i32_0 = arith.constant 0 : i32
    return %c0_i32, %arg1 : i32, i32
  }
  func.func @transform_3(%arg0: i32, %arg1: i32, %arg2: i32) -> (i32, i32) {
    %c0_i32 = arith.constant 0 : i32
    return %arg0, %arg1 : i32, i32
  }
}

module attributes {stable_mosaic.version = 11 : i64} {
  func.func @_ln2_kernel(%arg0: i32, %arg1: memref<16x32xf32, #tpu.memory_space<vmem>>, %arg2: memref<1x32xf32, #tpu.memory_space<vmem>>, %arg3: memref<1x32xf32, #tpu.memory_space<vmem>>, %arg4: memref<1x32xf32, #tpu.memory_space<vmem>>, %arg5: memref<1x32xf32, #tpu.memory_space<vmem>>, %arg6: memref<16x32xf32, #tpu.memory_space<vmem>>) attributes {dimension_semantics = [#tpu.dimension_semantics<parallel>], iteration_bounds = array<i64: 1>, scalar_prefetch = 0 : i64, scratch_operands = 0 : i64, tpu.core_type = #tpu.core_type<tc>, window_params = [{transform_indices = @transform_0, window_bounds = array<i64: 16, 32>}, {pipeline_mode = #tpu.pipeline_mode<synchronous>, transform_indices = @transform_1, window_bounds = array<i64: 1, 32>}, {pipeline_mode = #tpu.pipeline_mode<synchronous>, transform_indices = @transform_2, window_bounds = array<i64: 1, 32>}, {pipeline_mode = #tpu.pipeline_mode<synchronous>, transform_indices = @transform_3, window_bounds = array<i64: 1, 32>}, {pipeline_mode = #tpu.pipeline_mode<synchronous>, transform_indices = @transform_4, window_bounds = array<i64: 1, 32>}, {transform_indices = @transform_5, window_bounds = array<i64: 16, 32>}]} {
    %c0 = arith.constant 0 : index
    %c0_0 = arith.constant 0 : index
    %0 = vector.load %arg1[%c0, %c0_0] : memref<16x32xf32, #tpu.memory_space<vmem>>, vector<16x32xf32>
    %c0_1 = arith.constant 0 : index
    %c0_2 = arith.constant 0 : index
    %1 = vector.load %arg2[%c0_1, %c0_2] : memref<1x32xf32, #tpu.memory_space<vmem>>, vector<1x32xf32>
    %c0_3 = arith.constant 0 : index
    %c0_4 = arith.constant 0 : index
    %2 = vector.load %arg3[%c0_3, %c0_4] : memref<1x32xf32, #tpu.memory_space<vmem>>, vector<1x32xf32>
    %cst = arith.constant dense<0.000000e+00> : vector<16xf32>
    %3 = vector.multi_reduction <add>, %0, %cst [1] : vector<16x32xf32> to vector<16xf32>
    %4 = vector.shape_cast %3 : vector<16xf32> to vector<16x1xf32>
    %cst_5 = arith.constant 3.200000e+01 : f32
    %5 = vector.broadcast %cst_5 : f32 to vector<16x1xf32>
    %6 = arith.divf %4, %5 : vector<16x1xf32>
    %7 = vector.broadcast %6 : vector<16x1xf32> to vector<16x32xf32>
    %8 = arith.subf %0, %7 : vector<16x32xf32>
    %9 = arith.mulf %8, %8 : vector<16x32xf32>
    %cst_6 = arith.constant dense<0.000000e+00> : vector<16xf32>
    %10 = vector.multi_reduction <add>, %9, %cst_6 [1] : vector<16x32xf32> to vector<16xf32>
    %11 = vector.shape_cast %10 : vector<16xf32> to vector<16x1xf32>
    %cst_7 = arith.constant 3.200000e+01 : f32
    %12 = vector.broadcast %cst_7 : f32 to vector<16x1xf32>
    %13 = arith.divf %11, %12 : vector<16x1xf32>
    %cst_8 = arith.constant 9.99999997E-7 : f32
    %14 = vector.broadcast %cst_8 : f32 to vector<16x1xf32>
    %15 = arith.addf %13, %14 : vector<16x1xf32>
    %16 = math.rsqrt %15 : vector<16x1xf32>
    %17 = vector.broadcast %16 : vector<16x1xf32> to vector<16x32xf32>
    %18 = arith.mulf %8, %17 : vector<16x32xf32>
    %19 = vector.broadcast %1 : vector<1x32xf32> to vector<16x32xf32>
    %20 = arith.mulf %18, %19 : vector<16x32xf32>
    %21 = vector.broadcast %2 : vector<1x32xf32> to vector<16x32xf32>
    %22 = arith.addf %20, %21 : vector<16x32xf32>
    %c0_9 = arith.constant 0 : index
    %c0_10 = arith.constant 0 : index
    %23 = vector.load %arg4[%c0_9, %c0_10] : memref<1x32xf32, #tpu.memory_space<vmem>>, vector<1x32xf32>
    %c0_11 = arith.constant 0 : index
    %c0_12 = arith.constant 0 : index
    %24 = vector.load %arg5[%c0_11, %c0_12] : memref<1x32xf32, #tpu.memory_space<vmem>>, vector<1x32xf32>
    %cst_13 = arith.constant dense<0.000000e+00> : vector<16xf32>
    %25 = vector.multi_reduction <add>, %22, %cst_13 [1] : vector<16x32xf32> to vector<16xf32>
    %26 = vector.shape_cast %25 : vector<16xf32> to vector<16x1xf32>
    %cst_14 = arith.constant 3.200000e+01 : f32
    %27 = vector.broadcast %cst_14 : f32 to vector<16x1xf32>
    %28 = arith.divf %26, %27 : vector<16x1xf32>
    %29 = vector.broadcast %28 : vector<16x1xf32> to vector<16x32xf32>
    %30 = arith.subf %22, %29 : vector<16x32xf32>
    %31 = arith.mulf %30, %30 : vector<16x32xf32>
    %cst_15 = arith.constant dense<0.000000e+00> : vector<16xf32>
    %32 = vector.multi_reduction <add>, %31, %cst_15 [1] : vector<16x32xf32> to vector<16xf32>
    %33 = vector.shape_cast %32 : vector<16xf32> to vector<16x1xf32>
    %cst_16 = arith.constant 3.200000e+01 : f32
    %34 = vector.broadcast %cst_16 : f32 to vector<16x1xf32>
    %35 = arith.divf %33, %34 : vector<16x1xf32>
    %cst_17 = arith.constant 9.99999997E-7 : f32
    %36 = vector.broadcast %cst_17 : f32 to vector<16x1xf32>
    %37 = arith.addf %35, %36 : vector<16x1xf32>
    %38 = math.rsqrt %37 : vector<16x1xf32>
    %39 = vector.broadcast %38 : vector<16x1xf32> to vector<16x32xf32>
    %40 = arith.mulf %30, %39 : vector<16x32xf32>
    %41 = vector.broadcast %23 : vector<1x32xf32> to vector<16x32xf32>
    %42 = arith.mulf %40, %41 : vector<16x32xf32>
    %43 = vector.broadcast %24 : vector<1x32xf32> to vector<16x32xf32>
    %44 = arith.addf %42, %43 : vector<16x32xf32>
    %c0_18 = arith.constant 0 : index
    %c0_19 = arith.constant 0 : index
    %45 = vector.load %arg6[%c0_18, %c0_19] : memref<16x32xf32, #tpu.memory_space<vmem>>, vector<16x32xf32>
    tpu.vector_store %arg6[%c0_18, %c0_19], %44 {strides = array<i32>} : memref<16x32xf32, #tpu.memory_space<vmem>>, vector<16x32xf32>,
    return
  }
  func.func @transform_0(%arg0: i32) -> (i32, i32) {
    %c0_i32 = arith.constant 0 : i32
    %c0_i32_0 = arith.constant 0 : i32
    return %arg0, %c0_i32 : i32, i32
  }
  func.func @transform_1(%arg0: i32) -> (i32, i32) {
    %c0_i32 = arith.constant 0 : i32
    %c0_i32_0 = arith.constant 0 : i32
    %c0_i32_1 = arith.constant 0 : i32
    return %c0_i32, %c0_i32_0 : i32, i32
  }
  func.func @transform_2(%arg0: i32) -> (i32, i32) {
    %c0_i32 = arith.constant 0 : i32
    %c0_i32_0 = arith.constant 0 : i32
    %c0_i32_1 = arith.constant 0 : i32
    return %c0_i32, %c0_i32_0 : i32, i32
  }
  func.func @transform_3(%arg0: i32) -> (i32, i32) {
    %c0_i32 = arith.constant 0 : i32
    %c0_i32_0 = arith.constant 0 : i32
    %c0_i32_1 = arith.constant 0 : i32
    return %c0_i32, %c0_i32_0 : i32, i32
  }
  func.func @transform_4(%arg0: i32) -> (i32, i32) {
    %c0_i32 = arith.constant 0 : i32
    %c0_i32_0 = arith.constant 0 : i32
    %c0_i32_1 = arith.constant 0 : i32
    return %c0_i32, %c0_i32_0 : i32, i32
  }
  func.func @transform_5(%arg0: i32) -> (i32, i32) {
    %c0_i32 = arith.constant 0 : i32
    %c0_i32_0 = arith.constant 0 : i32
    return %arg0, %c0_i32 : i32, i32
  }
}

module attributes {stable_mosaic.version = 11 : i64} {
  func.func @_linear_kernel(%arg0: i32, %arg1: i32, %arg2: i32, %arg3: memref<16x32xf32, #tpu.memory_space<vmem>>, %arg4: memref<32x64xf32, #tpu.memory_space<vmem>>, %arg5: memref<1x64xf32, #tpu.memory_space<vmem>>, %arg6: memref<16x64xf32, #tpu.memory_space<vmem>>, %arg7: memref<16x64xf32, #tpu.memory_space<vmem>>) attributes {dimension_semantics = [#tpu.dimension_semantics<parallel>, #tpu.dimension_semantics<parallel>, #tpu.dimension_semantics<arbitrary>], iteration_bounds = array<i64: 1, 1, 1>, scalar_prefetch = 0 : i64, scratch_operands = 1 : i64, tpu.core_type = #tpu.core_type<tc>, window_params = [{transform_indices = @transform_0, window_bounds = array<i64: 16, 32>}, {transform_indices = @transform_1, window_bounds = array<i64: 32, 64>}, {transform_indices = @transform_2, window_bounds = array<i64: 1, 64>}, {transform_indices = @transform_3, window_bounds = array<i64: 16, 64>}]} {
    %c0_i32 = arith.constant 0 : i32
    %0 = arith.cmpi eq, %arg2, %c0_i32 : i32
    %1 = arith.extui %0 : i1 to i32
    %c0_i32_0 = arith.constant 0 : i32
    %2 = arith.cmpi ne, %1, %c0_i32_0 : i32
    scf.if %2 {
      %cst_10 = arith.constant 0.000000e+00 : f32
      %12 = vector.broadcast %cst_10 : f32 to vector<16x64xf32>
      %c0_11 = arith.constant 0 : index
      %c0_12 = arith.constant 0 : index
      %13 = vector.load %arg7[%c0_11, %c0_12] : memref<16x64xf32, #tpu.memory_space<vmem>>, vector<16x64xf32>
      tpu.vector_store %arg7[%c0_11, %c0_12], %12 {strides = array<i32>} : memref<16x64xf32, #tpu.memory_space<vmem>>, vector<16x64xf32>,
    } else {
    }
    %c0 = arith.constant 0 : index
    %c0_1 = arith.constant 0 : index
    %3 = vector.load %arg7[%c0, %c0_1] : memref<16x64xf32, #tpu.memory_space<vmem>>, vector<16x64xf32>
    %c0_2 = arith.constant 0 : index
    %c0_3 = arith.constant 0 : index
    %4 = vector.load %arg3[%c0_2, %c0_3] : memref<16x32xf32, #tpu.memory_space<vmem>>, vector<16x32xf32>
    %c0_4 = arith.constant 0 : index
    %c0_5 = arith.constant 0 : index
    %5 = vector.load %arg4[%c0_4, %c0_5] : memref<32x64xf32, #tpu.memory_space<vmem>>, vector<32x64xf32>
    %cst = arith.constant dense<0.000000e+00> : vector<16x64xf32>
    %6 = tpu.matmul %4, %5, %cst {dimension_numbers = #tpu.dot_dimension_numbers<[1], [0], [0], [1], [0, 0, 1, 1], [], []>} : vector<16x32xf32>, vector<32x64xf32>, vector<16x64xf32> -> vector<16x64xf32>
    %7 = arith.addf %3, %6 : vector<16x64xf32>
    %c0_6 = arith.constant 0 : index
    %c0_7 = arith.constant 0 : index
    %8 = vector.load %arg7[%c0_6, %c0_7] : memref<16x64xf32, #tpu.memory_space<vmem>>, vector<16x64xf32>
    tpu.vector_store %arg7[%c0_6, %c0_7], %7 {strides = array<i32>} : memref<16x64xf32, #tpu.memory_space<vmem>>, vector<16x64xf32>,
    %c0_i32_8 = arith.constant 0 : i32
    %9 = arith.cmpi eq, %arg2, %c0_i32_8 : i32
    %10 = arith.extui %9 : i1 to i32
    %c0_i32_9 = arith.constant 0 : i32
    %11 = arith.cmpi ne, %10, %c0_i32_9 : i32
    scf.if %11 {
      %c0_10 = arith.constant 0 : index
      %c0_11 = arith.constant 0 : index
      %12 = vector.load %arg7[%c0_10, %c0_11] : memref<16x64xf32, #tpu.memory_space<vmem>>, vector<16x64xf32>
      %c0_12 = arith.constant 0 : index
      %c0_13 = arith.constant 0 : index
      %13 = vector.load %arg5[%c0_12, %c0_13] : memref<1x64xf32, #tpu.memory_space<vmem>>, vector<1x64xf32>
      %14 = vector.broadcast %13 : vector<1x64xf32> to vector<16x64xf32>
      %15 = arith.addf %12, %14 : vector<16x64xf32>
      %c0_14 = arith.constant 0 : index
      %c0_15 = arith.constant 0 : index
      %16 = vector.load %arg6[%c0_14, %c0_15] : memref<16x64xf32, #tpu.memory_space<vmem>>, vector<16x64xf32>
      tpu.vector_store %arg6[%c0_14, %c0_15], %15 {strides = array<i32>} : memref<16x64xf32, #tpu.memory_space<vmem>>, vector<16x64xf32>,
    } else {
    }
    return
  }
  func.func @transform_0(%arg0: i32, %arg1: i32, %arg2: i32) -> (i32, i32) {
    %c0_i32 = arith.constant 0 : i32
    return %arg0, %arg2 : i32, i32
  }
  func.func @transform_1(%arg0: i32, %arg1: i32, %arg2: i32) -> (i32, i32) {
    %c0_i32 = arith.constant 0 : i32
    return %arg2, %arg1 : i32, i32
  }
  func.func @transform_2(%arg0: i32, %arg1: i32, %arg2: i32) -> (i32, i32) {
    %c0_i32 = arith.constant 0 : i32
    %c0_i32_0 = arith.constant 0 : i32
    return %c0_i32, %arg1 : i32, i32
  }
  func.func @transform_3(%arg0: i32, %arg1: i32, %arg2: i32) -> (i32, i32) {
    %c0_i32 = arith.constant 0 : i32
    return %arg0, %arg1 : i32, i32
  }
}

module attributes {stable_mosaic.version = 11 : i64} {
  func.func @_ln_kernel(%arg0: i32, %arg1: memref<16x32xf32, #tpu.memory_space<vmem>>, %arg2: memref<1x32xf32, #tpu.memory_space<vmem>>, %arg3: memref<1x32xf32, #tpu.memory_space<vmem>>, %arg4: memref<16x32xf32, #tpu.memory_space<vmem>>) attributes {dimension_semantics = [#tpu.dimension_semantics<parallel>], iteration_bounds = array<i64: 1>, scalar_prefetch = 0 : i64, scratch_operands = 0 : i64, tpu.core_type = #tpu.core_type<tc>, window_params = [{transform_indices = @transform_0, window_bounds = array<i64: 16, 32>}, {pipeline_mode = #tpu.pipeline_mode<synchronous>, transform_indices = @transform_1, window_bounds = array<i64: 1, 32>}, {pipeline_mode = #tpu.pipeline_mode<synchronous>, transform_indices = @transform_2, window_bounds = array<i64: 1, 32>}, {transform_indices = @transform_3, window_bounds = array<i64: 16, 32>}]} {
    %c0 = arith.constant 0 : index
    %c0_0 = arith.constant 0 : index
    %0 = vector.load %arg1[%c0, %c0_0] : memref<16x32xf32, #tpu.memory_space<vmem>>, vector<16x32xf32>
    %c0_1 = arith.constant 0 : index
    %c0_2 = arith.constant 0 : index
    %1 = vector.load %arg2[%c0_1, %c0_2] : memref<1x32xf32, #tpu.memory_space<vmem>>, vector<1x32xf32>
    %c0_3 = arith.constant 0 : index
    %c0_4 = arith.constant 0 : index
    %2 = vector.load %arg3[%c0_3, %c0_4] : memref<1x32xf32, #tpu.memory_space<vmem>>, vector<1x32xf32>
    %cst = arith.constant dense<0.000000e+00> : vector<16xf32>
    %3 = vector.multi_reduction <add>, %0, %cst [1] : vector<16x32xf32> to vector<16xf32>
    %4 = vector.shape_cast %3 : vector<16xf32> to vector<16x1xf32>
    %cst_5 = arith.constant 3.200000e+01 : f32
    %5 = vector.broadcast %cst_5 : f32 to vector<16x1xf32>
    %6 = arith.divf %4, %5 : vector<16x1xf32>
    %7 = vector.broadcast %6 : vector<16x1xf32> to vector<16x32xf32>
    %8 = arith.subf %0, %7 : vector<16x32xf32>
    %9 = arith.mulf %8, %8 : vector<16x32xf32>
    %cst_6 = arith.constant dense<0.000000e+00> : vector<16xf32>
    %10 = vector.multi_reduction <add>, %9, %cst_6 [1] : vector<16x32xf32> to vector<16xf32>
    %11 = vector.shape_cast %10 : vector<16xf32> to vector<16x1xf32>
    %cst_7 = arith.constant 3.200000e+01 : f32
    %12 = vector.broadcast %cst_7 : f32 to vector<16x1xf32>
    %13 = arith.divf %11, %12 : vector<16x1xf32>
    %cst_8 = arith.constant 9.99999997E-7 : f32
    %14 = vector.broadcast %cst_8 : f32 to vector<16x1xf32>
    %15 = arith.addf %13, %14 : vector<16x1xf32>
    %16 = math.rsqrt %15 : vector<16x1xf32>
    %17 = vector.broadcast %16 : vector<16x1xf32> to vector<16x32xf32>
    %18 = arith.mulf %8, %17 : vector<16x32xf32>
    %19 = vector.broadcast %1 : vector<1x32xf32> to vector<16x32xf32>
    %20 = arith.mulf %18, %19 : vector<16x32xf32>
    %21 = vector.broadcast %2 : vector<1x32xf32> to vector<16x32xf32>
    %22 = arith.addf %20, %21 : vector<16x32xf32>
    %c0_9 = arith.constant 0 : index
    %c0_10 = arith.constant 0 : index
    %23 = vector.load %arg4[%c0_9, %c0_10] : memref<16x32xf32, #tpu.memory_space<vmem>>, vector<16x32xf32>
    tpu.vector_store %arg4[%c0_9, %c0_10], %22 {strides = array<i32>} : memref<16x32xf32, #tpu.memory_space<vmem>>, vector<16x32xf32>,
    return
  }
  func.func @transform_0(%arg0: i32) -> (i32, i32) {
    %c0_i32 = arith.constant 0 : i32
    %c0_i32_0 = arith.constant 0 : i32
    return %arg0, %c0_i32 : i32, i32
  }
  func.func @transform_1(%arg0: i32) -> (i32, i32) {
    %c0_i32 = arith.constant 0 : i32
    %c0_i32_0 = arith.constant 0 : i32
    %c0_i32_1 = arith.constant 0 : i32
    return %c0_i32, %c0_i32_0 : i32, i32
  }
  func.func @transform_2(%arg0: i32) -> (i32, i32) {
    %c0_i32 = arith.constant 0 : i32
    %c0_i32_0 = arith.constant 0 : i32
    %c0_i32_1 = arith.constant 0 : i32
    return %c0_i32, %c0_i32_0 : i32, i32
  }
  func.func @transform_3(%arg0: i32) -> (i32, i32) {
    %c0_i32 = arith.constant 0 : i32
    %c0_i32_0 = arith.constant 0 : i32
    return %arg0, %c0_i32 : i32, i32
  }
}

</mosaic_0001>

<bundles_post_ra>
// kernel: encoder_decoder_concat_fwd.73
= control target key start
LH: loop header
LB: loop body
LE: loop exit
PB: predicated region body
PF: predicated region fallthrough
CT: control target
= control target key end

     0   :  { %vm29_vm0 = vcmask 261120   ;;  %vm18_vm1 = vcmask 785408   ;;  %v157_v2 = vmov 0.0   ;;  %s213_s1 = inlined_call_operand.vmem [shape: f32[32,96], index: 1, kind: input, shape index: {}]   ;;  %s214_s0 = inlined_call_operand.vmem [shape: f32[16,32], index: 0, kind: input, shape index: {}]   ;;  %s215_s2 = inlined_call_operand.vmem [shape: f32[1,96], index: 2, kind: input, shape index: {}]   ;;  %s216_s3 = inlined_call_operand.vmem [shape: f32[16,96], index: 3, kind: output, shape index: {}]  }
   0x1   :  { %v28_v0 = vld [vmem:[%s213_s1 + $0x18] sm:$0xff]  ;;  %v27_v1 = vld [vmem:[%s213_s1 + $0x10] sm:$0xff]  ;;  %20 = vst.msk [vmem:[#allocation2 + $0x8] sm:$0xff] %vm18_vm1, %v157_v2  ;;  %19 = vst.msk [vmem:[#allocation2] sm:$0xff] %vm18_vm1, %v157_v2 }
   0x2   :  { %145 = vmatprep.subr.mxu0 %v28_v0  ;;  %v23_v3 = vld [vmem:[%s214_s0] sm:$0xff]  ;;  %v26_v4 = vld [vmem:[%s213_s1 + $0x8] sm:$0xff] }
   0x3   :  { %146 = vmatpush3.msra.mxu0 %v28_v0  ;;  %153 = vmatprep.mubr.msk.f32.mxu0 %vm29_vm0, %v23_v3  ;;  %v25_v5 = vld [vmem:[%s213_s1] sm:$0xff]  ;;  %v24_v6 = vld [vmem:[%s214_s0 + $0x8] sm:$0xff] }
   0x4   :  { %147 = vmatprep.subr.mxu0 %v27_v1  ;;  %v138_v13 = vld [vmem:[%s215_s2] ss:$0 sm:$0xff] }
   0x5   :  { %148 = vmatpush3.msra.mxu0 %v27_v1 }
   0x6   :  { %149 = vmatprep.subr.mxu0 %v26_v4 }
   0x7   :  { %150 = vmatpush3.msra.mxu0 %v26_v4 }
   0x8   :  { %151 = vmatprep.subr.mxu0 %v25_v5  ;;  %v22_v7 = vld [vmem:[#allocation2 + $0x8] sm:$0xff]  ;;  %v21_v9 = vld [vmem:[#allocation2] sm:$0xff] }
   0x9   :  { %152 = vmatpush3.msra.mxu0 %v25_v5 }
   0xa   :  { %154 = vmatmul.mubr.msk.f32.vlgmr.msra.gmra.mxu0 %vm29_vm0, %v24_v6 }
  0xca   :  { %v155_v8 = vpop.f32.mrf.mxu0 }
  0xcb   :  { %v112_v10 = vadd.f32 %v155_v8, %v22_v7 }
  0xcc   :  { %v102_v11 = vpop.f32.mrf.mxu0 }
  0xcd   :  { %115 = vst.msk [vmem:[#allocation2 + $0x8] sm:$0xff] %vm18_vm1, %v112_v10  ;;  %v111_v12 = vadd.f32 %v102_v11, %v21_v9 }
  0xcf   :  { %114 = vst.msk [vmem:[#allocation2] sm:$0xff] %vm18_vm1, %v111_v12 }
  0xd4   :  { %v120_v14 = vld [vmem:[#allocation2 + $0x8] sm:$0xff] }
  0xd5   :  { %v129_v15 = vadd.f32 %v138_v13, %v120_v14 }
  0xd6   :  { %v119_v16 = vld [vmem:[#allocation2] sm:$0xff] }
  0xd7   :  { %131 = vst.msk [vmem:[%s216_s3 + $0x8] sm:$0xff] %vm18_vm1, %v129_v15  ;;  %v128_v17 = vadd.f32 %v138_v13, %v119_v16 }
  0xd9   :  { %130 = vst.msk [vmem:[%s216_s3] sm:$0xff] %vm18_vm1, %v128_v17 }

// kernel: encoder_decoder_concat_fwd.75
= control target key start
LH: loop header
LB: loop body
LE: loop exit
PB: predicated region body
PF: predicated region fallthrough
CT: control target
= control target key end

     0   :  { %vm18_vm0 = vcmask 261120   ;;  %v156_v2 = vmov 0.0   ;;  %s212_s1 = inlined_call_operand.vmem [shape: f32[32,32], index: 1, kind: input, shape index: {}]   ;;  %s213_s0 = inlined_call_operand.vmem [shape: f32[16,32], index: 0, kind: input, shape index: {}]   ;;  %s214_s2 = inlined_call_operand.vmem [shape: f32[1,32], index: 2, kind: input, shape index: {}]   ;;  %s215_s3 = inlined_call_operand.vmem [shape: f32[16,32], index: 3, kind: output, shape index: {}]  }
   0x1   :  { %v28_v0 = vld [vmem:[%s212_s1 + $0x18] sm:$0xff]  ;;  %v27_v1 = vld [vmem:[%s212_s1 + $0x10] sm:$0xff]  ;;  %20 = vst.msk [vmem:[#allocation2 + $0x8] sm:$0xff] %vm18_vm0, %v156_v2  ;;  %19 = vst.msk [vmem:[#allocation2] sm:$0xff] %vm18_vm0, %v156_v2 }
   0x2   :  { %144 = vmatprep.subr.mxu0 %v28_v0  ;;  %v23_v3 = vld [vmem:[%s213_s0] sm:$0xff]  ;;  %v26_v4 = vld [vmem:[%s212_s1 + $0x8] sm:$0xff] }
   0x3   :  { %145 = vmatpush3.msra.mxu0 %v28_v0  ;;  %152 = vmatprep.mubr.msk.f32.mxu0 %vm18_vm0, %v23_v3  ;;  %v25_v5 = vld [vmem:[%s212_s1] sm:$0xff]  ;;  %v24_v6 = vld [vmem:[%s213_s0 + $0x8] sm:$0xff] }
   0x4   :  { %146 = vmatprep.subr.mxu0 %v27_v1  ;;  %v137_v13 = vld [vmem:[%s214_s2] ss:$0 sm:$0xff] }
   0x5   :  { %147 = vmatpush3.msra.mxu0 %v27_v1 }
   0x6   :  { %148 = vmatprep.subr.mxu0 %v26_v4 }
   0x7   :  { %149 = vmatpush3.msra.mxu0 %v26_v4 }
   0x8   :  { %150 = vmatprep.subr.mxu0 %v25_v5  ;;  %v22_v7 = vld [vmem:[#allocation2 + $0x8] sm:$0xff]  ;;  %v21_v9 = vld [vmem:[#allocation2] sm:$0xff] }
   0x9   :  { %151 = vmatpush3.msra.mxu0 %v25_v5 }
   0xa   :  { %153 = vmatmul.mubr.msk.f32.vlgmr.msra.gmra.mxu0 %vm18_vm0, %v24_v6 }
  0xca   :  { %v154_v8 = vpop.f32.mrf.mxu0 }
  0xcb   :  { %v112_v10 = vadd.f32 %v154_v8, %v22_v7 }
  0xcc   :  { %v102_v11 = vpop.f32.mrf.mxu0 }
  0xcd   :  { %114 = vst.msk [vmem:[#allocation2 + $0x8] sm:$0xff] %vm18_vm0, %v112_v10  ;;  %v111_v12 = vadd.f32 %v102_v11, %v21_v9 }
  0xcf   :  { %113 = vst.msk [vmem:[#allocation2] sm:$0xff] %vm18_vm0, %v111_v12 }
  0xd4   :  { %v119_v14 = vld [vmem:[#allocation2 + $0x8] sm:$0xff] }
  0xd5   :  { %v128_v15 = vadd.f32 %v137_v13, %v119_v14 }
  0xd6   :  { %v118_v16 = vld [vmem:[#allocation2] sm:$0xff] }
  0xd7   :  { %130 = vst.msk [vmem:[%s215_s3 + $0x8] sm:$0xff] %vm18_vm0, %v128_v15  ;;  %v127_v17 = vadd.f32 %v137_v13, %v118_v16 }
  0xd9   :  { %129 = vst.msk [vmem:[%s215_s3] sm:$0xff] %vm18_vm0, %v127_v17 }

// kernel: encoder_decoder_concat_fwd.74
= control target key start
LH: loop header
LB: loop body
LE: loop exit
PB: predicated region body
PF: predicated region fallthrough
CT: control target
= control target key end

     0   :  { %s1094_s12 = smov 0   ;;  %s1171_s0 = inlined_call_operand.vmem [shape: f32[2,4,8,8], index: 0, kind: input, shape index: {}]   ;;  %s1172_s1 = inlined_call_operand.vmem [shape: f32[2,4,8,8], index: 1, kind: input, shape index: {}]   ;;  %s1173_s2 = inlined_call_operand.vmem [shape: f32[2,4,8,8], index: 2, kind: input, shape index: {}]   ;;  %s1174_s3 = inlined_call_operand.vmem [shape: f32[2,4,8,8], index: 3, kind: output, shape index: {}]  }
   0x1 LB: > { %s951_s13 = sadd.s32 4294967295, %s1070_s12   ;;  %p955_p0 = scmp.ge.s32.totalorder %s1070_s12, 1  ;;  %s1070_s12 = sphi %s1094_s12, %s13_s12  }
   0x2   : > { %p157_p1 = scmp.lt.s32.totalorder %s1070_s12, 3 }
   0x4   : > { %p158_p2 = pnand %p955_p0, %p157_p1 }
   0x5   : > { %p191_p3 = scmp.lt.s32.totalorder (!%p158_p2), %s951_s13, 1 }
   0x6   : > { %161 = sbr.rel (%p158_p2) target bundleno = 728 (0x2d8), region = 32 }
   0xb   : > { %v1072_v0 = vmov 0.0   ;;  %vm1073_vm0 = vmmov 0   ;;  %s1176_s13 = smov (!%p191_p3, %s951_s13), 1  ;;  %vm223_vm1 = vcmask 64512  }
   0xc   : > { %998 = vmatprep.subr.mxu0 %v1072_v0  ;;  %1000 = vmatprep.mubr.msk.f32.mxu0 %vm1073_vm0, %v1072_v0  ;;  %s1108_s14 = sshll.u32 %s1176_s13, 5 }
   0xd   : > { %1003 = vmatprep.subr.mxu1 %v1072_v0  ;;  %1005 = vmatprep.mubr.msk.f32.mxu1 %vm1073_vm0, %v1072_v0  ;;  %s200_s17 = scalar_lea.vmem %s1172_s1, %s1108_s14  ;;  %s195_s20 = scalar_lea.vmem %s1171_s0, %s1108_s14 }
   0xe   : > { %v215_v1 = vld [vmem:[%s200_s17] sm:$0xff]  ;;  %v216_v2 = vld [vmem:[%s200_s17 + $0x8] sm:$0xff]  ;;  %v217_v5 = vld [vmem:[%s200_s17 + $0x10] sm:$0xff]  ;;  %s205_s23 = scalar_lea.vmem %s1173_s2, %s1108_s14  ;;  %s210_s26 = scalar_lea.vmem %s1174_s3, %s1108_s14 }
   0xf   : > { %999 = vmatpush3.xpose.msk.msra.mxu0 %vm223_vm1, %v215_v1  ;;  %v211_v3 = vld [vmem:[%s195_s20] sm:$0xff]  ;;  %1004 = vmatpush3.xpose.msk.msra.mxu1 %vm223_vm1, %v216_v2  ;;  %v212_v4 = vld [vmem:[%s195_s20 + $0x8] sm:$0xff]  ;;  %v218_v6 = vld [vmem:[%s200_s17 + $0x18] sm:$0xff] }
  0x10   : > { %1008 = vmatprep.subr.mxu0 %v1072_v0  ;;  %1013 = vmatprep.subr.mxu1 %v1072_v0  ;;  %v213_v7 = vld [vmem:[%s195_s20 + $0x10] sm:$0xff]  ;;  %v214_v8 = vld [vmem:[%s195_s20 + $0x18] sm:$0xff]  ;;  %v219_v45 = vld [vmem:[%s205_s23] sm:$0xff] }
  0x11   : > { %v220_v46 = vld [vmem:[%s205_s23 + $0x8] sm:$0xff]  ;;  %v221_v53 = vld [vmem:[%s205_s23 + $0x10] sm:$0xff]  ;;  %v222_v57 = vld [vmem:[%s205_s23 + $0x18] sm:$0xff] }
  0x12   : > { %1001 = vmatmul.mubr.msk.f32.vlgmr.msra.gmra.mxu0 %vm223_vm1, %v211_v3  ;;  %1006 = vmatmul.mubr.msk.f32.vlgmr.msra.gmra.mxu1 %vm223_vm1, %v212_v4 }
  0x13   : > { %1009 = vmatpush3.xpose.msk.msra.mxu0 %vm223_vm1, %v217_v5  ;;  %1010 = vmatprep.mubr.msk.f32.mxu0 %vm1073_vm0, %v1072_v0 }
  0x14   : > { %1014 = vmatpush3.xpose.msk.msra.mxu1 %vm223_vm1, %v218_v6  ;;  %1015 = vmatprep.mubr.msk.f32.mxu1 %vm1073_vm0, %v1072_v0 }
  0x15   : > { %1018 = vmatprep.subr.mxu0 %v1072_v0  ;;  %1023 = vmatprep.subr.mxu1 %v1072_v0 }
  0x16   : > { %1011 = vmatmul.mubr.msk.f32.vlgmr.msra.gmra.mxu0 %vm223_vm1, %v213_v7 }
  0x17   : > { %1016 = vmatmul.mubr.msk.f32.vlgmr.msra.gmra.mxu1 %vm223_vm1, %v214_v8  ;;  %1020 = vmatprep.mubr.msk.f32.mxu0 %vm1073_vm0, %v1072_v0 }
  0x18   : > { %1025 = vmatprep.mubr.msk.f32.mxu1 %vm1073_vm0, %v1072_v0  ;;  %1019 = vmatpush3.msra.mxu0 %v219_v45 }
  0x19   : > { %1028 = vmatprep.subr.mxu0 %v1072_v0  ;;  %1024 = vmatpush3.msra.mxu1 %v220_v46 }
  0x1a   : > { %1033 = vmatprep.subr.mxu1 %v1072_v0 }
  0xd2   : > { %v296_v9 = vpop.f32.mrf.mxu0  ;;  %v372_v10 = vpop.f32.mrf.mxu1 }
  0xd3   : > { %v528_v11 = vmul.f32 0.35355338, %v296_v9  ;;  %v529_v12 = vmul.f32 0.35355338, %v372_v10 }
  0xd4   : > { %v1002_v13 = vpop.f32.mrf.mxu0  ;;  %v1007_v14 = vpop.f32.mrf.mxu1 }
  0xd5   : > { %v532_v15 = vsel %vm223_vm1, %v528_v11, -inf  ;;  %v535_v19 = vsel %vm223_vm1, %v529_v12, -inf }
  0xd6   : > { %533 = vmax.xlane.f32.xlu0 %v532_v15  ;;  %v448_v16 = vpop.f32.mrf.mxu0 }
  0xd7   : > { %v530_v17 = vmul.f32 0.35355338, %v448_v16  ;;  %v524_v18 = vpop.f32.mrf.mxu1 }
  0xd8   : > { %v1012_v20 = vpop.f32.mrf.mxu0  ;;  %v531_v21 = vmul.f32 0.35355338, %v524_v18 }
  0xd9   : > { %v538_v22 = vsel %vm223_vm1, %v530_v17, -inf  ;;  %v1017_v23 = vpop.f32.mrf.mxu1 }
  0xda   : > { %536 = vmax.xlane.f32.xlu0 %v535_v19  ;;  %539 = vmax.xlane.f32.xlu1 %v538_v22  ;;  %v541_v24 = vsel %vm223_vm1, %v531_v21, -inf }
  0xde   : > { %542 = vmax.xlane.f32.xlu1 %v541_v24 }
 0x15f   : > { %v534_v25 = vpop.xlane.xlu0 %533 }
 0x160   : > { %v544_v26 = vsub.f32 %v528_v11, %v534_v25 }
 0x162   : > { %v548_v27 = vmul.f32 1.442695, %v544_v26 }
 0x163   : > { %v537_v28 = vpop.xlane.xlu0 %536  ;;  %v540_v29 = vpop.xlane.xlu1 %539 }
 0x164   : > { %1048 = vpow2.f32 %v548_v27  ;;  %v545_v30 = vsub.f32 %v529_v12, %v537_v28  ;;  %v546_v31 = vsub.f32 %v530_v17, %v540_v29 }
 0x166   : > { %v550_v32 = vmul.f32 1.442695, %v545_v30  ;;  %v552_v33 = vmul.f32 1.442695, %v546_v31 }
 0x167   : > { %v543_v34 = vpop.xlane.xlu1 %542 }
 0x168   : > { %1050 = vpow2.f32 %v550_v32  ;;  %v547_v35 = vsub.f32 %v531_v21, %v543_v34 }
 0x169   : > { %1052 = vpow2.f32 %v552_v33 }
 0x16a   : > { %v554_v36 = vmul.f32 1.442695, %v547_v35 }
 0x16c   : > { %1054 = vpow2.f32 %v554_v36 }
 0x171   : > { %v1049_v37 = vpop.eup %1048 }
 0x172   : > { %v556_v38 = vsel %vm223_vm1, %v1049_v37, 0.0 }
 0x173   : > { %557 = vadd.xlane.f32.xlu0 %v556_v38 }
 0x175   : > { %v1051_v39 = vpop.eup %1050 }
 0x176   : > { %v1053_v40 = vpop.eup %1052  ;;  %v559_v41 = vsel %vm223_vm1, %v1051_v39, 0.0 }
 0x177   : > { %560 = vadd.xlane.f32.xlu1 %v559_v41  ;;  %v562_v42 = vsel %vm223_vm1, %v1053_v40, 0.0 }
 0x178   : > { %563 = vadd.xlane.f32.xlu0 %v562_v42 }
 0x179   : > { %v1055_v43 = vpop.eup %1054 }
 0x17a   : > { %v565_v44 = vsel %vm223_vm1, %v1055_v43, 0.0 }
 0x17b   : > { %566 = vadd.xlane.f32.xlu1 %v565_v44 }
 0x1fc   : > { %v558_v47 = vpop.xlane.xlu0 %557 }
 0x1fd   : > { %1056 = vrcp.f32 %v558_v47 }
 0x200   : > { %v561_v48 = vpop.xlane.xlu1 %560 }
 0x201   : > { %v564_v49 = vpop.xlane.xlu0 %563  ;;  %1058 = vrcp.f32 %v561_v48 }
 0x202   : > { %1060 = vrcp.f32 %v564_v49 }
 0x204   : > { %v567_v50 = vpop.xlane.xlu1 %566 }
 0x205   : > { %1062 = vrcp.f32 %v567_v50 }
 0x20a   : > { %v1057_v51 = vpop.eup %1056 }
 0x20b   : > { %v572_v52 = vmul.f32 %v1057_v51, %v1049_v37 }
 0x20d   : > { %1021 = vmatmul.mubr.msk.f32.vlgmr.msra.gmra.mxu0 %vm223_vm1, %v572_v52 }
 0x20e   : > { %v1059_v54 = vpop.eup %1058  ;;  %1029 = vmatpush3.msra.mxu0 %v221_v53  ;;  %1030 = vmatprep.mubr.msk.f32.mxu0 %vm1073_vm0, %v1072_v0 }
 0x20f   : > { %v1061_v55 = vpop.eup %1060  ;;  %v573_v56 = vmul.f32 %v1059_v54, %v1051_v39 }
 0x210   : > { %v574_v58 = vmul.f32 %v1061_v55, %v1053_v40 }
 0x211   : > { %1026 = vmatmul.mubr.msk.f32.vlgmr.msra.gmra.mxu1 %vm223_vm1, %v573_v56 }
 0x212   : > { %v1063_v59 = vpop.eup %1062  ;;  %1031 = vmatmul.mubr.msk.f32.vlgmr.msra.gmra.mxu0 %vm223_vm1, %v574_v58  ;;  %1034 = vmatpush3.msra.mxu1 %v222_v57 }
 0x213   : > { %1035 = vmatprep.mubr.msk.f32.mxu1 %vm1073_vm0, %v1072_v0  ;;  %v575_v60 = vmul.f32 %v1063_v59, %v1055_v43 }
 0x215   : > { %1036 = vmatmul.mubr.msk.f32.vlgmr.msra.gmra.mxu1 %vm223_vm1, %v575_v60 }
 0x2cd   : > { %v645_v61 = vpop.f32.mrf.mxu0 }
 0x2ce   : > { %868 = vst.msk [vmem:[%s210_s26] sm:$0xff] %vm223_vm1, %v645_v61 }
 0x2cf   : > { %v1022_v62 = vpop.f32.mrf.mxu0 }
 0x2d1   : > { %v718_v63 = vpop.f32.mrf.mxu1 }
 0x2d2   : > { %869 = vst.msk [vmem:[%s210_s26 + $0x8] sm:$0xff] %vm223_vm1, %v718_v63  ;;  %v791_v1 = vpop.f32.mrf.mxu0 }
 0x2d3   : > { %870 = vst.msk [vmem:[%s210_s26 + $0x10] sm:$0xff] %vm223_vm1, %v791_v1  ;;  %v1027_v2 = vpop.f32.mrf.mxu1 }
 0x2d4   : > { %v1032_v3 = vpop.f32.mrf.mxu0 }
 0x2d5   : > { %v864_v0 = vpop.f32.mrf.mxu1 }
 0x2d6   : > { %871 = vst.msk [vmem:[%s210_s26 + $0x18] sm:$0xff] %vm223_vm1, %v864_v0 }
 0x2d7   : > { %v1037_v4 = vpop.f32.mrf.mxu1 }
 0x2d8 PF: > { %s13_s12 = sadd.s32 1, %s1070_s12  }
 0x2d9   : > { %p10_p4 = scmp.ge.s32.totalorder %s13_s12, 4  }
 0x2db   :  { %12 = sbr.rel (!%p10_p4) target bundleno = 1 (0x1), region = 68 }

// kernel: encoder_decoder_concat_fwd.76
= control target key start
LH: loop header
LB: loop body
LE: loop exit
PB: predicated region body
PF: predicated region fallthrough
CT: control target
= control target key end

     0   :  { %vm25_vm0 = vcmask 261120   ;;  %s136_s0 = inlined_call_operand.vmem [shape: f32[16,32], index: 0, kind: input, shape index: {}]   ;;  %s137_s1 = inlined_call_operand.vmem [shape: f32[16,32], index: 1, kind: input, shape index: {}]   ;;  %s138_s2 = inlined_call_operand.vmem [shape: f32[1,32], index: 2, kind: input, shape index: {}]   ;;  %s139_s3 = inlined_call_operand.vmem [shape: f32[1,32], index: 3, kind: input, shape index: {}]   ;;  %s140_s4 = inlined_call_operand.vmem [shape: f32[16,32], index: 4, kind: output, shape index: {}]  }
   0x1   :  { %v17_v0 = vld [vmem:[%s136_s0] sm:$0xff]  ;;  %v18_v2 = vld [vmem:[%s136_s0 + $0x8] sm:$0xff] }
   0x2   :  { %v19_v1 = vld [vmem:[%s137_s1] sm:$0xff]  ;;  %v20_v4 = vld [vmem:[%s137_s1 + $0x8] sm:$0xff] }
   0x3   :  { %v21_v3 = vadd.f32 %v19_v1, %v17_v0  ;;  %v22_v5 = vadd.f32 %v20_v4, %v18_v2  ;;  %v75_v25 = vld [vmem:[%s138_s2] ss:$0 sm:$0xff] }
   0x4   :  { %v76_v27 = vld [vmem:[%s139_s3] ss:$0 sm:$0xff] }
   0x5   :  { %v26_v6 = vsel %vm25_vm0, %v21_v3, 0.0  ;;  %v29_v7 = vsel %vm25_vm0, %v22_v5, 0.0 }
   0x6   :  { %27 = vadd.xlane.f32.xlu0 %v26_v6 }
   0xa   :  { %30 = vadd.xlane.f32.xlu0 %v29_v7 }
  0x8f   :  { %v28_v8 = vpop.xlane.xlu0 %27 }
  0x90   :  { %v33_v9 = vmul.f32 0.03125, %v28_v8 }
  0x92   :  { %v35_v10 = vsub.f32 %v21_v3, %v33_v9 }
  0x93   :  { %v31_v11 = vpop.xlane.xlu0 %30 }
  0x94   :  { %v34_v12 = vmul.f32 0.03125, %v31_v11  ;;  %v37_v13 = vmul.f32 %v35_v10, %v35_v10 }
  0x96   :  { %v36_v14 = vsub.f32 %v22_v5, %v34_v12  ;;  %v39_v15 = vsel %vm25_vm0, %v37_v13, 0.0 }
  0x97   :  { %40 = vadd.xlane.f32.xlu1 %v39_v15 }
  0x98   :  { %v38_v16 = vmul.f32 %v36_v14, %v36_v14 }
  0x9a   :  { %v42_v17 = vsel %vm25_vm0, %v38_v16, 0.0 }
  0x9b   :  { %43 = vadd.xlane.f32.xlu1 %v42_v17 }
 0x120   :  { %v41_v18 = vpop.xlane.xlu1 %40 }
 0x121   :  { %v45_v19 = vmul.f32 0.03125, %v41_v18 }
 0x123   :  { %v47_v20 = vadd.f32 1e-05, %v45_v19 }
 0x124   :  { %v44_v21 = vpop.xlane.xlu1 %43 }
 0x125   :  { %77 = vrsqrt.f32 %v47_v20  ;;  %v46_v22 = vmul.f32 0.03125, %v44_v21 }
 0x127   :  { %v48_v23 = vadd.f32 1e-05, %v46_v22 }
 0x129   :  { %79 = vrsqrt.f32 %v48_v23 }
 0x132   :  { %v78_v24 = vpop.eup %77 }
 0x133   :  { %v51_v26 = vmul.f32 %v78_v24, %v35_v10 }
 0x135   :  { %v59_v28 = vmul.f32 %v75_v25, %v51_v26 }
 0x136   :  { %v80_v29 = vpop.eup %79 }
 0x137   :  { %v67_v30 = vadd.f32 %v76_v27, %v59_v28  ;;  %v52_v31 = vmul.f32 %v80_v29, %v36_v14 }
 0x139   :  { %69 = vst.msk [vmem:[%s140_s4] sm:$0xff] %vm25_vm0, %v67_v30  ;;  %v60_v32 = vmul.f32 %v75_v25, %v52_v31 }
 0x13b   :  { %v68_v33 = vadd.f32 %v76_v27, %v60_v32 }
 0x13d   :  { %70 = vst.msk [vmem:[%s140_s4 + $0x8] sm:$0xff] %vm25_vm0, %v68_v33 }

// kernel: encoder_decoder_concat_fwd.54
= control target key start
LH: loop header
LB: loop body
LE: loop exit
PB: predicated region body
PF: predicated region fallthrough
CT: control target
= control target key end

     0   :  { %vm18_vm0 = vcmask 261120   ;;  %vm33_vm1 = vcmask 523264   ;;  %v173_v2 = vmov 0.0   ;;  %s241_s1 = inlined_call_operand.vmem [shape: f32[64,32], index: 1, kind: input, shape index: {}]   ;;  %s242_s0 = inlined_call_operand.vmem [shape: f32[16,64], index: 0, kind: input, shape index: {}]   ;;  %s243_s2 = inlined_call_operand.vmem [shape: f32[1,32], index: 2, kind: input, shape index: {}]   ;;  %s244_s3 = inlined_call_operand.vmem [shape: f32[16,32], index: 3, kind: output, shape index: {}]  }
   0x1   :  { %v32_v0 = vld [vmem:[%s241_s1 + $0x38] sm:$0xff]  ;;  %v31_v1 = vld [vmem:[%s241_s1 + $0x30] sm:$0xff]  ;;  %20 = vst.msk [vmem:[#allocation2 + $0x8] sm:$0xff] %vm18_vm0, %v173_v2  ;;  %19 = vst.msk [vmem:[#allocation2] sm:$0xff] %vm18_vm0, %v173_v2 }
   0x2   :  { %153 = vmatprep.subr.mxu0 %v32_v0  ;;  %v30_v3 = vld [vmem:[%s241_s1 + $0x28] sm:$0xff]  ;;  %v23_v4 = vld [vmem:[%s242_s0] sm:$0xff]  ;;  %v28_v6 = vld [vmem:[%s241_s1 + $0x18] sm:$0xff] }
   0x3   :  { %154 = vmatpush3.msra.mxu0 %v32_v0  ;;  %169 = vmatprep.mubr.msk.f32.mxu0 %vm33_vm1, %v23_v4  ;;  %v29_v5 = vld [vmem:[%s241_s1 + $0x20] sm:$0xff]  ;;  %v27_v7 = vld [vmem:[%s241_s1 + $0x10] sm:$0xff]  ;;  %v26_v8 = vld [vmem:[%s241_s1 + $0x8] sm:$0xff] }
   0x4   :  { %155 = vmatprep.subr.mxu0 %v31_v1  ;;  %v25_v9 = vld [vmem:[%s241_s1] sm:$0xff]  ;;  %v24_v10 = vld [vmem:[%s242_s0 + $0x8] sm:$0xff] }
   0x5   :  { %156 = vmatpush3.msra.mxu0 %v31_v1  ;;  %v142_v17 = vld [vmem:[%s243_s2] ss:$0 sm:$0xff] }
   0x6   :  { %157 = vmatprep.subr.mxu0 %v30_v3 }
   0x7   :  { %158 = vmatpush3.msra.mxu0 %v30_v3 }
   0x8   :  { %159 = vmatprep.subr.mxu0 %v29_v5  ;;  %v22_v11 = vld [vmem:[#allocation2 + $0x8] sm:$0xff]  ;;  %v21_v13 = vld [vmem:[#allocation2] sm:$0xff] }
   0x9   :  { %160 = vmatpush3.msra.mxu0 %v29_v5 }
   0xa   :  { %161 = vmatprep.subr.mxu0 %v28_v6 }
   0xb   :  { %162 = vmatpush3.msra.mxu0 %v28_v6 }
   0xc   :  { %163 = vmatprep.subr.mxu0 %v27_v7 }
   0xd   :  { %164 = vmatpush3.msra.mxu0 %v27_v7 }
   0xe   :  { %165 = vmatprep.subr.mxu0 %v26_v8 }
   0xf   :  { %166 = vmatpush3.msra.mxu0 %v26_v8 }
  0x10   :  { %167 = vmatprep.subr.mxu0 %v25_v9 }
  0x11   :  { %168 = vmatpush3.msra.mxu0 %v25_v9 }
  0x12   :  { %170 = vmatmul.mubr.msk.f32.vlgmr.msra.gmra.mxu0 %vm33_vm1, %v24_v10 }
  0xd2   :  { %v171_v12 = vpop.f32.mrf.mxu0 }
  0xd3   :  { %v116_v14 = vadd.f32 %v171_v12, %v22_v11 }
  0xd4   :  { %v106_v15 = vpop.f32.mrf.mxu0 }
  0xd5   :  { %119 = vst.msk [vmem:[#allocation2 + $0x8] sm:$0xff] %vm18_vm0, %v116_v14  ;;  %v115_v16 = vadd.f32 %v106_v15, %v21_v13 }
  0xd7   :  { %118 = vst.msk [vmem:[#allocation2] sm:$0xff] %vm18_vm0, %v115_v16 }
  0xdc   :  { %v124_v18 = vld [vmem:[#allocation2 + $0x8] sm:$0xff] }
  0xdd   :  { %v133_v19 = vadd.f32 %v142_v17, %v124_v18 }
  0xde   :  { %v123_v20 = vld [vmem:[#allocation2] sm:$0xff] }
  0xdf   :  { %135 = vst.msk [vmem:[%s244_s3 + $0x8] sm:$0xff] %vm18_vm0, %v133_v19  ;;  %v132_v21 = vadd.f32 %v142_v17, %v123_v20 }
  0xe1   :  { %134 = vst.msk [vmem:[%s244_s3] sm:$0xff] %vm18_vm0, %v132_v21 }

// kernel: encoder_decoder_concat_fwd.53
= control target key start
LH: loop header
LB: loop body
LE: loop exit
PB: predicated region body
PF: predicated region fallthrough
CT: control target
= control target key end

     0   :  { %vm29_vm0 = vcmask 261120   ;;  %vm18_vm1 = vcmask 523264   ;;  %v159_v2 = vmov 0.0   ;;  %s215_s1 = inlined_call_operand.vmem [shape: f32[32,64], index: 1, kind: input, shape index: {}]   ;;  %s216_s0 = inlined_call_operand.vmem [shape: f32[16,32], index: 0, kind: input, shape index: {}]   ;;  %s217_s2 = inlined_call_operand.vmem [shape: f32[1,64], index: 2, kind: input, shape index: {}]   ;;  %s218_s3 = inlined_call_operand.vmem [shape: f32[16,64], index: 3, kind: output, shape index: {}]  }
   0x1   :  { %v28_v0 = vld [vmem:[%s215_s1 + $0x18] sm:$0xff]  ;;  %v27_v1 = vld [vmem:[%s215_s1 + $0x10] sm:$0xff]  ;;  %20 = vst.msk [vmem:[#allocation2 + $0x8] sm:$0xff] %vm18_vm1, %v159_v2  ;;  %19 = vst.msk [vmem:[#allocation2] sm:$0xff] %vm18_vm1, %v159_v2 }
   0x2   :  { %147 = vmatprep.subr.mxu0 %v28_v0  ;;  %v23_v3 = vld [vmem:[%s216_s0] sm:$0xff]  ;;  %v26_v4 = vld [vmem:[%s215_s1 + $0x8] sm:$0xff] }
   0x3   :  { %148 = vmatpush3.msra.mxu0 %v28_v0  ;;  %155 = vmatprep.mubr.msk.f32.mxu0 %vm29_vm0, %v23_v3  ;;  %v25_v5 = vld [vmem:[%s215_s1] sm:$0xff]  ;;  %v24_v6 = vld [vmem:[%s216_s0 + $0x8] sm:$0xff] }
   0x4   :  { %149 = vmatprep.subr.mxu0 %v27_v1  ;;  %v140_v13 = vld [vmem:[%s217_s2] ss:$0 sm:$0xff] }
   0x5   :  { %150 = vmatpush3.msra.mxu0 %v27_v1 }
   0x6   :  { %151 = vmatprep.subr.mxu0 %v26_v4 }
   0x7   :  { %152 = vmatpush3.msra.mxu0 %v26_v4 }
   0x8   :  { %153 = vmatprep.subr.mxu0 %v25_v5  ;;  %v22_v7 = vld [vmem:[#allocation2 + $0x8] sm:$0xff]  ;;  %v21_v9 = vld [vmem:[#allocation2] sm:$0xff] }
   0x9   :  { %154 = vmatpush3.msra.mxu0 %v25_v5 }
   0xa   :  { %156 = vmatmul.mubr.msk.f32.vlgmr.msra.gmra.mxu0 %vm29_vm0, %v24_v6 }
  0xca   :  { %v157_v8 = vpop.f32.mrf.mxu0 }
  0xcb   :  { %v112_v10 = vadd.f32 %v157_v8, %v22_v7 }
  0xcc   :  { %v102_v11 = vpop.f32.mrf.mxu0 }
  0xcd   :  { %115 = vst.msk [vmem:[#allocation2 + $0x8] sm:$0xff] %vm18_vm1, %v112_v10  ;;  %v111_v12 = vadd.f32 %v102_v11, %v21_v9 }
  0xcf   :  { %114 = vst.msk [vmem:[#allocation2] sm:$0xff] %vm18_vm1, %v111_v12 }
  0xd4   :  { %v120_v14 = vld [vmem:[#allocation2 + $0x8] sm:$0xff] }
  0xd5   :  { %v129_v15 = vadd.f32 %v140_v13, %v120_v14 }
  0xd6   :  { %v119_v16 = vld [vmem:[#allocation2] sm:$0xff] }
  0xd7   :  { %v131_v17 = vmax.f32 %v129_v15, 0.0  ;;  %v128_v18 = vadd.f32 %v140_v13, %v119_v16 }
  0xd9   :  { %133 = vst.msk [vmem:[%s218_s3 + $0x8] sm:$0xff] %vm18_vm1, %v131_v17  ;;  %v130_v19 = vmax.f32 %v128_v18, 0.0 }
  0xdb   :  { %132 = vst.msk [vmem:[%s218_s3] sm:$0xff] %vm18_vm1, %v130_v19 }

// kernel: encoder_decoder_concat_fwd.71
= control target key start
LH: loop header
LB: loop body
LE: loop exit
PB: predicated region body
PF: predicated region fallthrough
CT: control target
= control target key end

     0   :  { %vm18_vm0 = vcmask 261120   ;;  %v196_v2 = vmov 0.0   ;;  %s286_s1 = inlined_call_operand.vmem [shape: f32[128,32], index: 1, kind: input, shape index: {}]   ;;  %s287_s0 = inlined_call_operand.vmem [shape: f32[16,128], index: 0, kind: input, shape index: {}]   ;;  %s288_s2 = inlined_call_operand.vmem [shape: f32[1,32], index: 2, kind: input, shape index: {}]   ;;  %s289_s3 = inlined_call_operand.vmem [shape: f32[16,32], index: 3, kind: output, shape index: {}]  }
   0x1   :  { %v40_v0 = vld [vmem:[%s286_s1 + $0x78] sm:$0xff]  ;;  %v39_v1 = vld [vmem:[%s286_s1 + $0x70] sm:$0xff]  ;;  %20 = vst.msk [vmem:[#allocation2 + $0x8] sm:$0xff] %vm18_vm0, %v196_v2  ;;  %19 = vst.msk [vmem:[#allocation2] sm:$0xff] %vm18_vm0, %v196_v2 }
   0x2   :  { %160 = vmatprep.subr.mxu0 %v40_v0  ;;  %v38_v3 = vld [vmem:[%s286_s1 + $0x68] sm:$0xff]  ;;  %v37_v4 = vld [vmem:[%s286_s1 + $0x60] sm:$0xff]  ;;  %v36_v6 = vld [vmem:[%s286_s1 + $0x58] sm:$0xff] }
   0x3   :  { %161 = vmatpush3.msra.mxu0 %v40_v0  ;;  %v23_v5 = vld [vmem:[%s287_s0] sm:$0xff]  ;;  %v35_v7 = vld [vmem:[%s286_s1 + $0x50] sm:$0xff]  ;;  %v34_v8 = vld [vmem:[%s286_s1 + $0x48] sm:$0xff] }
   0x4   :  { %162 = vmatprep.subr.mxu0 %v39_v1  ;;  %192 = vmatprep.mubr.f32.mxu0 %v23_v5  ;;  %v33_v9 = vld [vmem:[%s286_s1 + $0x40] sm:$0xff]  ;;  %v32_v10 = vld [vmem:[%s286_s1 + $0x38] sm:$0xff]  ;;  %v31_v11 = vld [vmem:[%s286_s1 + $0x30] sm:$0xff] }
   0x5   :  { %163 = vmatpush3.msra.mxu0 %v39_v1  ;;  %v30_v12 = vld [vmem:[%s286_s1 + $0x28] sm:$0xff]  ;;  %v29_v13 = vld [vmem:[%s286_s1 + $0x20] sm:$0xff]  ;;  %v28_v14 = vld [vmem:[%s286_s1 + $0x18] sm:$0xff] }
   0x6   :  { %164 = vmatprep.subr.mxu0 %v38_v3  ;;  %v27_v15 = vld [vmem:[%s286_s1 + $0x10] sm:$0xff]  ;;  %v26_v16 = vld [vmem:[%s286_s1 + $0x8] sm:$0xff]  ;;  %v25_v17 = vld [vmem:[%s286_s1] sm:$0xff] }
   0x7   :  { %165 = vmatpush3.msra.mxu0 %v38_v3  ;;  %v24_v18 = vld [vmem:[%s287_s0 + $0x8] sm:$0xff]  ;;  %v141_v25 = vld [vmem:[%s288_s2] ss:$0 sm:$0xff] }
   0x8   :  { %166 = vmatprep.subr.mxu0 %v37_v4  ;;  %v22_v19 = vld [vmem:[#allocation2 + $0x8] sm:$0xff]  ;;  %v21_v21 = vld [vmem:[#allocation2] sm:$0xff] }
   0x9   :  { %167 = vmatpush3.msra.mxu0 %v37_v4 }
   0xa   :  { %168 = vmatprep.subr.mxu0 %v36_v6 }
   0xb   :  { %169 = vmatpush3.msra.mxu0 %v36_v6 }
   0xc   :  { %170 = vmatprep.subr.mxu0 %v35_v7 }
   0xd   :  { %171 = vmatpush3.msra.mxu0 %v35_v7 }
   0xe   :  { %172 = vmatprep.subr.mxu0 %v34_v8 }
   0xf   :  { %173 = vmatpush3.msra.mxu0 %v34_v8 }
  0x10   :  { %174 = vmatprep.subr.mxu0 %v33_v9 }
  0x11   :  { %175 = vmatpush3.msra.mxu0 %v33_v9 }
  0x12   :  { %176 = vmatprep.subr.mxu0 %v32_v10 }
  0x13   :  { %177 = vmatpush3.msra.mxu0 %v32_v10 }
  0x14   :  { %178 = vmatprep.subr.mxu0 %v31_v11 }
  0x15   :  { %179 = vmatpush3.msra.mxu0 %v31_v11 }
  0x16   :  { %180 = vmatprep.subr.mxu0 %v30_v12 }
  0x17   :  { %181 = vmatpush3.msra.mxu0 %v30_v12 }
  0x18   :  { %182 = vmatprep.subr.mxu0 %v29_v13 }
  0x19   :  { %183 = vmatpush3.msra.mxu0 %v29_v13 }
  0x1a   :  { %184 = vmatprep.subr.mxu0 %v28_v14 }
  0x1b   :  { %185 = vmatpush3.msra.mxu0 %v28_v14 }
  0x1c   :  { %186 = vmatprep.subr.mxu0 %v27_v15 }
  0x1d   :  { %187 = vmatpush3.msra.mxu0 %v27_v15 }
  0x1e   :  { %188 = vmatprep.subr.mxu0 %v26_v16 }
  0x1f   :  { %189 = vmatpush3.msra.mxu0 %v26_v16 }
  0x20   :  { %190 = vmatprep.subr.mxu0 %v25_v17 }
  0x21   :  { %191 = vmatpush3.msra.mxu0 %v25_v17 }
  0x22   :  { %193 = vmatmul.mubr.f32.vlgmr.msra.gmra.mxu0 %v24_v18 }
  0xe2   :  { %v194_v20 = vpop.f32.mrf.mxu0 }
  0xe3   :  { %v117_v22 = vadd.f32 %v194_v20, %v22_v19 }
  0xe4   :  { %v107_v23 = vpop.f32.mrf.mxu0 }
  0xe5   :  { %120 = vst.msk [vmem:[#allocation2 + $0x8] sm:$0xff] %vm18_vm0, %v117_v22  ;;  %v116_v24 = vadd.f32 %v107_v23, %v21_v21 }
  0xe7   :  { %119 = vst.msk [vmem:[#allocation2] sm:$0xff] %vm18_vm0, %v116_v24 }
  0xec   :  { %v125_v26 = vld [vmem:[#allocation2 + $0x8] sm:$0xff] }
  0xed   :  { %v134_v27 = vadd.f32 %v141_v25, %v125_v26 }
  0xee   :  { %v124_v28 = vld [vmem:[#allocation2] sm:$0xff] }
  0xef   :  { %136 = vst.msk [vmem:[%s289_s3 + $0x8] sm:$0xff] %vm18_vm0, %v134_v27  ;;  %v133_v29 = vadd.f32 %v141_v25, %v124_v28 }
  0xf1   :  { %135 = vst.msk [vmem:[%s289_s3] sm:$0xff] %vm18_vm0, %v133_v29 }

// kernel: encoder_decoder_concat_fwd.70
= control target key start
LH: loop header
LB: loop body
LE: loop exit
PB: predicated region body
PF: predicated region fallthrough
CT: control target
= control target key end

     0   :  { %vm32_vm0 = vcmask 523264   ;;  %v233_v53 = vmov -1.0   ;;  %s295_s1 = inlined_call_operand.vmem [shape: f32[64,128], index: 1, kind: input, shape index: {}]   ;;  %s296_s0 = inlined_call_operand.vmem [shape: f32[16,64], index: 0, kind: input, shape index: {}]   ;;  %s297_s2 = inlined_call_operand.vmem [shape: f32[1,128], index: 2, kind: input, shape index: {}]   ;;  %s298_s3 = inlined_call_operand.vmem [shape: f32[16,128], index: 3, kind: output, shape index: {}]  }
   0x1   :  { %v31_v0 = vld [vmem:[%s295_s1 + $0x38] sm:$0xff]  ;;  %v30_v1 = vld [vmem:[%s295_s1 + $0x30] sm:$0xff]  ;;  %v29_v2 = vld [vmem:[%s295_s1 + $0x28] sm:$0xff] }
   0x2   :  { %205 = vmatprep.subr.mxu0 %v31_v0  ;;  %v22_v3 = vld [vmem:[%s296_s0] sm:$0xff]  ;;  %v27_v5 = vld [vmem:[%s295_s1 + $0x18] sm:$0xff]  ;;  %v26_v6 = vld [vmem:[%s295_s1 + $0x10] sm:$0xff] }
   0x3   :  { %206 = vmatpush3.msra.mxu0 %v31_v0  ;;  %221 = vmatprep.mubr.msk.f32.mxu0 %vm32_vm0, %v22_v3  ;;  %v28_v4 = vld [vmem:[%s295_s1 + $0x20] sm:$0xff]  ;;  %v25_v7 = vld [vmem:[%s295_s1 + $0x8] sm:$0xff] }
   0x4   :  { %207 = vmatprep.subr.mxu0 %v30_v1  ;;  %v24_v8 = vld [vmem:[%s295_s1] sm:$0xff]  ;;  %v23_v9 = vld [vmem:[%s296_s0 + $0x8] sm:$0xff] }
   0x5   :  { %208 = vmatpush3.msra.mxu0 %v30_v1  ;;  %v194_v10 = vld [vmem:[%s297_s2] ss:$0 sm:$0xff] }
   0x6   :  { %209 = vmatprep.subr.mxu0 %v29_v2 }
   0x7   :  { %210 = vmatpush3.msra.mxu0 %v29_v2 }
   0x8   :  { %211 = vmatprep.subr.mxu0 %v28_v4 }
   0x9   :  { %212 = vmatpush3.msra.mxu0 %v28_v4 }
   0xa   :  { %213 = vmatprep.subr.mxu0 %v27_v5 }
   0xb   :  { %214 = vmatpush3.msra.mxu0 %v27_v5 }
   0xc   :  { %215 = vmatprep.subr.mxu0 %v26_v6 }
   0xd   :  { %216 = vmatpush3.msra.mxu0 %v26_v6 }
   0xe   :  { %217 = vmatprep.subr.mxu0 %v25_v7 }
   0xf   :  { %218 = vmatpush3.msra.mxu0 %v25_v7 }
  0x10   :  { %219 = vmatprep.subr.mxu0 %v24_v8 }
  0x11   :  { %220 = vmatpush3.msra.mxu0 %v24_v8 }
  0x12   :  { %222 = vmatmul.mubr.msk.f32.vlgmr.msra.gmra.mxu0 %vm32_vm0, %v23_v9 }
  0xd2   :  { %v223_v11 = vpop.f32.mrf.mxu0 }
  0xd3   :  { %v131_v12 = vadd.f32 %v223_v11, %v194_v10 }
  0xd4   :  { %v105_v13 = vpop.f32.mrf.mxu0 }
  0xd5   :  { %v135_v14 = vmul.f32 0.70710677, %v131_v12  ;;  %v130_v15 = vadd.f32 %v194_v10, %v105_v13  ;;  %v133_v58 = vmul.f32 0.5, %v131_v12 }
  0xd7   :  { %v141_v16 = vand.u32 2147483647, %v135_v14  ;;  %v134_v17 = vmul.f32 0.70710677, %v130_v15  ;;  %vm137_vm1 = vcmp.ge.f32.partialorder %v135_v14, 0.0  ;;  %v132_v63 = vmul.f32 0.5, %v130_v15 }
  0xd8   :  { %v139_v54 = vsel %vm137_vm1, 1.0, %v233_v53 }
  0xd9   :  { %v143_v18 = vmul.f32 0.3275911, %v141_v16  ;;  %v140_v19 = vand.u32 2147483647, %v134_v17  ;;  %v169_v23 = vsub.f32 0.0, %v141_v16  ;;  %vm136_vm2 = vcmp.ge.f32.partialorder %v134_v17, 0.0 }
  0xda   :  { %v138_v60 = vsel %vm136_vm2, 1.0, %v233_v53 }
  0xdb   :  { %v145_v20 = vadd.f32 1.0, %v143_v18  ;;  %v142_v21 = vmul.f32 0.3275911, %v140_v19  ;;  %v168_v24 = vsub.f32 0.0, %v140_v19  ;;  %v171_v25 = vmul.f32 %v169_v23, %v141_v16 }
  0xdd   :  { %225 = vrcp.f32 %v145_v20  ;;  %v144_v22 = vadd.f32 1.0, %v142_v21  ;;  %v170_v27 = vmul.f32 %v168_v24, %v140_v19  ;;  %v174_v29 = vmul.f32 1.442695, %v171_v25 }
  0xdf   :  { %227 = vrcp.f32 %v144_v22  ;;  %v172_v33 = vmul.f32 1.442695, %v170_v27 }
  0xe0   :  { %229 = vpow2.f32 %v174_v29 }
  0xe1   :  { %231 = vpow2.f32 %v172_v33 }
  0xea   :  { %v226_v26 = vpop.eup %225 }
  0xeb   :  { %v151_v28 = vmul.f32 1.0614054, %v226_v26 }
  0xec   :  { %v228_v30 = vpop.eup %227 }
  0xed   :  { %v153_v31 = vadd.f32 -1.4531521, %v151_v28  ;;  %v150_v32 = vmul.f32 1.0614054, %v228_v30  ;;  %v230_v47 = vpop.eup %229 }
  0xee   :  { %v232_v51 = vpop.eup %231 }
  0xef   :  { %v155_v34 = vmul.f32 %v226_v26, %v153_v31  ;;  %v152_v35 = vadd.f32 -1.4531521, %v150_v32 }
  0xf1   :  { %v157_v36 = vadd.f32 1.4214138, %v155_v34  ;;  %v154_v37 = vmul.f32 %v228_v30, %v152_v35 }
  0xf3   :  { %v159_v38 = vmul.f32 %v226_v26, %v157_v36  ;;  %v156_v39 = vadd.f32 1.4214138, %v154_v37 }
  0xf5   :  { %v161_v40 = vadd.f32 -0.28449672, %v159_v38  ;;  %v158_v41 = vmul.f32 %v228_v30, %v156_v39 }
  0xf7   :  { %v163_v42 = vmul.f32 %v226_v26, %v161_v40  ;;  %v160_v43 = vadd.f32 -0.28449672, %v158_v41 }
  0xf9   :  { %v165_v44 = vadd.f32 0.2548296, %v163_v42  ;;  %v162_v45 = vmul.f32 %v228_v30, %v160_v43 }
  0xfb   :  { %v167_v46 = vmul.f32 %v226_v26, %v165_v44  ;;  %v164_v48 = vadd.f32 0.2548296, %v162_v45 }
  0xfd   :  { %v177_v49 = vmul.f32 %v230_v47, %v167_v46  ;;  %v166_v50 = vmul.f32 %v228_v30, %v164_v48 }
  0xff   :  { %v179_v52 = vsub.f32 1.0, %v177_v49  ;;  %v176_v55 = vmul.f32 %v232_v51, %v166_v50 }
 0x101   :  { %v181_v56 = vmul.f32 %v179_v52, %v139_v54  ;;  %v178_v57 = vsub.f32 1.0, %v176_v55 }
 0x103   :  { %v183_v59 = vadd.f32 1.0, %v181_v56  ;;  %v180_v61 = vmul.f32 %v178_v57, %v138_v60 }
 0x105   :  { %v185_v62 = vmul.f32 %v183_v59, %v133_v58  ;;  %v182_v0 = vadd.f32 1.0, %v180_v61 }
 0x107   :  { %187 = vst [vmem:[%s298_s3 + $0x8] sm:$0xff] %v185_v62  ;;  %v184_v1 = vmul.f32 %v182_v0, %v132_v63 }
 0x109   :  { %186 = vst [vmem:[%s298_s3] sm:$0xff] %v184_v1 }

// kernel: encoder_decoder_concat_fwd.72
= control target key start
LH: loop header
LB: loop body
LE: loop exit
PB: predicated region body
PF: predicated region fallthrough
CT: control target
= control target key end

     0   :  { %vm24_vm0 = vcmask 261120   ;;  %s194_s0 = inlined_call_operand.vmem [shape: f32[16,32], index: 0, kind: input, shape index: {}]   ;;  %s195_s1 = inlined_call_operand.vmem [shape: f32[1,32], index: 1, kind: input, shape index: {}]   ;;  %s196_s2 = inlined_call_operand.vmem [shape: f32[1,32], index: 2, kind: input, shape index: {}]   ;;  %s197_s3 = inlined_call_operand.vmem [shape: f32[1,32], index: 3, kind: input, shape index: {}]   ;;  %s198_s4 = inlined_call_operand.vmem [shape: f32[1,32], index: 4, kind: input, shape index: {}]   ;;  %s199_s5 = inlined_call_operand.vmem [shape: f32[16,32], index: 5, kind: output, shape index: {}]  }
   0x1   :  { %v20_v0 = vld [vmem:[%s194_s0] sm:$0xff]  ;;  %v21_v1 = vld [vmem:[%s194_s0 + $0x8] sm:$0xff] }
   0x2   :  { %v25_v2 = vsel %vm24_vm0, %v20_v0, 0.0  ;;  %v28_v3 = vsel %vm24_vm0, %v21_v1, 0.0  ;;  %v118_v21 = vld [vmem:[%s195_s1] ss:$0 sm:$0xff] }
   0x3   :  { %26 = vadd.xlane.f32.xlu0 %v25_v2  ;;  %v119_v23 = vld [vmem:[%s196_s2] ss:$0 sm:$0xff] }
   0x4   :  { %v120_v49 = vld [vmem:[%s197_s3] ss:$0 sm:$0xff] }
   0x5   :  { %v121_v51 = vld [vmem:[%s198_s4] ss:$0 sm:$0xff] }
   0x7   :  { %29 = vadd.xlane.f32.xlu0 %v28_v3 }
  0x8c   :  { %v27_v4 = vpop.xlane.xlu0 %26 }
  0x8d   :  { %v32_v5 = vmul.f32 0.03125, %v27_v4 }
  0x8f   :  { %v34_v6 = vsub.f32 %v20_v0, %v32_v5 }
  0x90   :  { %v30_v7 = vpop.xlane.xlu0 %29 }
  0x91   :  { %v33_v8 = vmul.f32 0.03125, %v30_v7  ;;  %v36_v9 = vmul.f32 %v34_v6, %v34_v6 }
  0x93   :  { %v35_v10 = vsub.f32 %v21_v1, %v33_v8  ;;  %v38_v11 = vsel %vm24_vm0, %v36_v9, 0.0 }
  0x94   :  { %39 = vadd.xlane.f32.xlu1 %v38_v11 }
  0x95   :  { %v37_v12 = vmul.f32 %v35_v10, %v35_v10 }
  0x97   :  { %v41_v13 = vsel %vm24_vm0, %v37_v12, 0.0 }
  0x98   :  { %42 = vadd.xlane.f32.xlu1 %v41_v13 }
 0x11d   :  { %v40_v14 = vpop.xlane.xlu1 %39 }
 0x11e   :  { %v44_v15 = vmul.f32 0.03125, %v40_v14 }
 0x120   :  { %v46_v16 = vadd.f32 1e-06, %v44_v15 }
 0x121   :  { %v43_v17 = vpop.xlane.xlu1 %42 }
 0x122   :  { %122 = vrsqrt.f32 %v46_v16  ;;  %v45_v18 = vmul.f32 0.03125, %v43_v17 }
 0x124   :  { %v47_v19 = vadd.f32 1e-06, %v45_v18 }
 0x126   :  { %124 = vrsqrt.f32 %v47_v19 }
 0x12f   :  { %v123_v20 = vpop.eup %122 }
 0x130   :  { %v50_v22 = vmul.f32 %v123_v20, %v34_v6 }
 0x132   :  { %v58_v24 = vmul.f32 %v118_v21, %v50_v22 }
 0x133   :  { %v125_v25 = vpop.eup %124 }
 0x134   :  { %v66_v26 = vadd.f32 %v119_v23, %v58_v24  ;;  %v51_v27 = vmul.f32 %v125_v25, %v35_v10 }
 0x136   :  { %v70_v28 = vsel %vm24_vm0, %v66_v26, 0.0  ;;  %v59_v29 = vmul.f32 %v118_v21, %v51_v27 }
 0x137   :  { %71 = vadd.xlane.f32.xlu0 %v70_v28 }
 0x138   :  { %v67_v30 = vadd.f32 %v119_v23, %v59_v29 }
 0x13a   :  { %v73_v31 = vsel %vm24_vm0, %v67_v30, 0.0 }
 0x13b   :  { %74 = vadd.xlane.f32.xlu1 %v73_v31 }
 0x1c0   :  { %v72_v32 = vpop.xlane.xlu0 %71 }
 0x1c1   :  { %v76_v33 = vmul.f32 0.03125, %v72_v32 }
 0x1c3   :  { %v78_v34 = vsub.f32 %v66_v26, %v76_v33 }
 0x1c4   :  { %v75_v35 = vpop.xlane.xlu1 %74 }
 0x1c5   :  { %v77_v36 = vmul.f32 0.03125, %v75_v35  ;;  %v80_v37 = vmul.f32 %v78_v34, %v78_v34 }
 0x1c7   :  { %v79_v38 = vsub.f32 %v67_v30, %v77_v36  ;;  %v82_v39 = vsel %vm24_vm0, %v80_v37, 0.0 }
 0x1c8   :  { %83 = vadd.xlane.f32.xlu0 %v82_v39 }
 0x1c9   :  { %v81_v40 = vmul.f32 %v79_v38, %v79_v38 }
 0x1cb   :  { %v85_v41 = vsel %vm24_vm0, %v81_v40, 0.0 }
 0x1cc   :  { %86 = vadd.xlane.f32.xlu1 %v85_v41 }
 0x251   :  { %v84_v42 = vpop.xlane.xlu0 %83 }
 0x252   :  { %v88_v43 = vmul.f32 0.03125, %v84_v42 }
 0x254   :  { %v90_v44 = vadd.f32 1e-06, %v88_v43 }
 0x255   :  { %v87_v45 = vpop.xlane.xlu1 %86 }
 0x256   :  { %126 = vrsqrt.f32 %v90_v44  ;;  %v89_v46 = vmul.f32 0.03125, %v87_v45 }
 0x258   :  { %v91_v47 = vadd.f32 1e-06, %v89_v46 }
 0x25a   :  { %128 = vrsqrt.f32 %v91_v47 }
 0x263   :  { %v127_v48 = vpop.eup %126 }
 0x264   :  { %v94_v50 = vmul.f32 %v127_v48, %v78_v34 }
 0x266   :  { %v102_v52 = vmul.f32 %v120_v49, %v94_v50 }
 0x267   :  { %v129_v53 = vpop.eup %128 }
 0x268   :  { %v110_v54 = vadd.f32 %v121_v51, %v102_v52  ;;  %v95_v55 = vmul.f32 %v129_v53, %v79_v38 }
 0x26a   :  { %112 = vst.msk [vmem:[%s199_s5] sm:$0xff] %vm24_vm0, %v110_v54  ;;  %v103_v56 = vmul.f32 %v120_v49, %v95_v55 }
 0x26c   :  { %v111_v57 = vadd.f32 %v121_v51, %v103_v56 }
 0x26e   :  { %113 = vst.msk [vmem:[%s199_s5 + $0x8] sm:$0xff] %vm24_vm0, %v111_v57 }

// kernel: encoder_decoder_concat_fwd.97
= control target key start
LH: loop header
LB: loop body
LE: loop exit
PB: predicated region body
PF: predicated region fallthrough
CT: control target
= control target key end

     0   :  { %vm19_vm0 = vcmask 261120   ;;  %s156_s0 = inlined_call_operand.vmem [shape: f32[16,32], index: 0, kind: input, shape index: {}]   ;;  %s157_s1 = inlined_call_operand.vmem [shape: f32[1,32], index: 1, kind: input, shape index: {}]   ;;  %s158_s2 = inlined_call_operand.vmem [shape: f32[1,32], index: 2, kind: input, shape index: {}]   ;;  %s159_s3 = inlined_call_operand.hbm [shape: f32[16,32], index: 3, kind: output, shape index: {}]  }
   0x1   :  { %v15_v0 = vld [vmem:[%s156_s0] sm:$0xff]  ;;  %v16_v1 = vld [vmem:[%s156_s0 + $0x8] sm:$0xff] }
   0x2   :  { %8 = vsyncpa [#allocation3], 0  ;;  %v20_v2 = vsel %vm19_vm0, %v15_v0, 0.0  ;;  %v23_v3 = vsel %vm19_vm0, %v16_v1, 0.0  ;;  %v81_v21 = vld [vmem:[%s157_s1] ss:$0 sm:$0xff] }
   0x3   :  { %21 = vadd.xlane.f32.xlu0 %v20_v2  ;;  %v82_v23 = vld [vmem:[%s158_s2] ss:$0 sm:$0xff]  ;;  %s112_s19 = smov [#allocation2]  }
   0x4   :  { %s70_s20 = sshll.u32 %s112_s19, 4  ;;  %s71_s20 = int_to_ptr.vmem [resolvable:$true] %s70_s20 }
   0x5   :  { %s90_s21 = scalar_lea.vmem %s71_s20, 256  ;;  %p95_p1 = scmp.lt.s32.totalorder %s71_s20, %s71_s20 }
   0x6   :  { %p91_p0 = scmp.ne.s32.totalorder %s71_s20, %s90_s21  ;;  %p96_p2 = scmp.lt.s32.totalorder %s90_s21, %s90_s21 }
   0x7   :  { %24 = vadd.xlane.f32.xlu0 %v23_v3 }
   0x8   :  { %p97_p3 = por %p96_p2, %p95_p1 }
   0xa   :  { %p98_p4 = pnand %p97_p3, %p91_p0 }
  0x8c   :  { %v22_v4 = vpop.xlane.xlu0 %21 }
  0x8d   :  { %v27_v5 = vmul.f32 0.03125, %v22_v4 }
  0x8f   :  { %v29_v6 = vsub.f32 %v15_v0, %v27_v5 }
  0x90   :  { %v25_v7 = vpop.xlane.xlu0 %24 }
  0x91   :  { %v28_v8 = vmul.f32 0.03125, %v25_v7  ;;  %v31_v9 = vmul.f32 %v29_v6, %v29_v6 }
  0x93   :  { %v30_v10 = vsub.f32 %v16_v1, %v28_v8  ;;  %v33_v11 = vsel %vm19_vm0, %v31_v9, 0.0 }
  0x94   :  { %34 = vadd.xlane.f32.xlu1 %v33_v11 }
  0x95   :  { %v32_v12 = vmul.f32 %v30_v10, %v30_v10 }
  0x97   :  { %v36_v13 = vsel %vm19_vm0, %v32_v12, 0.0 }
  0x98   :  { %37 = vadd.xlane.f32.xlu1 %v36_v13 }
 0x11d   :  { %v35_v14 = vpop.xlane.xlu1 %34 }
 0x11e   :  { %v39_v15 = vmul.f32 0.03125, %v35_v14 }
 0x120   :  { %v41_v16 = vadd.f32 1e-06, %v39_v15 }
 0x121   :  { %v38_v17 = vpop.xlane.xlu1 %37 }
 0x122   :  { %86 = vrsqrt.f32 %v41_v16  ;;  %v40_v18 = vmul.f32 0.03125, %v38_v17 }
 0x124   :  { %v42_v19 = vadd.f32 1e-06, %v40_v18 }
 0x126   :  { %88 = vrsqrt.f32 %v42_v19 }
 0x12f   :  { %v87_v20 = vpop.eup %86 }
 0x130   :  { %v45_v22 = vmul.f32 %v87_v20, %v29_v6 }
 0x132   :  { %v53_v24 = vmul.f32 %v81_v21, %v45_v22 }
 0x133   :  { %v89_v25 = vpop.eup %88 }
 0x134   :  { %v46_v26 = vmul.f32 %v89_v25, %v30_v10  ;;  %v61_v27 = vadd.f32 %v82_v23, %v53_v24 }
 0x136   :  { %v54_v28 = vmul.f32 %v81_v21, %v46_v26  ;;  %63 = vst.msk [vmem:[#allocation2] sm:$0xff] %vm19_vm0, %v61_v27 }
 0x138   :  { %v62_v29 = vadd.f32 %v82_v23, %v54_v28 }
 0x13a   :  { %64 = vst.msk [vmem:[#allocation2 + $0x8] sm:$0xff] %vm19_vm0, %v62_v29 }
 0x13b   :  { %101 = shalt.err (!%p98_p4)
}
 0x13c   :  { %s113_s1 = smov 128   ;;  %s114_s2 = smov 8  }
 0x13d   :  { %76 = dma.vmem_to_hbm [thread:$0]  %s71_s20, 256, %s159_s3, [#allocation3], %s113_s1, %s113_s1, %s114_s2  }
 0x13e   :  { %110 = dma.done.wait [#allocation3], 256  }
 0x13f   :  { %111 = vsyncadd [#allocation3], 4294967040 }
 0x140   :  { %80 = vsyncpa [#allocation3], 1 }

// kernel: encoder_decoder_concat_fwd.78
= control target key start
LH: loop header
LB: loop body
LE: loop exit
PB: predicated region body
PF: predicated region fallthrough
CT: control target
= control target key end

     0   :  { %vm29_vm0 = vcmask 261120   ;;  %vm18_vm1 = vcmask 523264   ;;  %v157_v2 = vmov 0.0   ;;  %s213_s1 = inlined_call_operand.vmem [shape: f32[32,64], index: 1, kind: input, shape index: {}]   ;;  %s214_s0 = inlined_call_operand.vmem [shape: f32[16,32], index: 0, kind: input, shape index: {}]   ;;  %s215_s2 = inlined_call_operand.vmem [shape: f32[1,64], index: 2, kind: input, shape index: {}]   ;;  %s216_s3 = inlined_call_operand.vmem [shape: f32[16,64], index: 3, kind: output, shape index: {}]  }
   0x1   :  { %v28_v0 = vld [vmem:[%s213_s1 + $0x18] sm:$0xff]  ;;  %v27_v1 = vld [vmem:[%s213_s1 + $0x10] sm:$0xff]  ;;  %20 = vst.msk [vmem:[#allocation2 + $0x8] sm:$0xff] %vm18_vm1, %v157_v2  ;;  %19 = vst.msk [vmem:[#allocation2] sm:$0xff] %vm18_vm1, %v157_v2 }
   0x2   :  { %145 = vmatprep.subr.mxu0 %v28_v0  ;;  %v23_v3 = vld [vmem:[%s214_s0] sm:$0xff]  ;;  %v26_v4 = vld [vmem:[%s213_s1 + $0x8] sm:$0xff] }
   0x3   :  { %146 = vmatpush3.msra.mxu0 %v28_v0  ;;  %153 = vmatprep.mubr.msk.f32.mxu0 %vm29_vm0, %v23_v3  ;;  %v25_v5 = vld [vmem:[%s213_s1] sm:$0xff]  ;;  %v24_v6 = vld [vmem:[%s214_s0 + $0x8] sm:$0xff] }
   0x4   :  { %147 = vmatprep.subr.mxu0 %v27_v1  ;;  %v138_v13 = vld [vmem:[%s215_s2] ss:$0 sm:$0xff] }
   0x5   :  { %148 = vmatpush3.msra.mxu0 %v27_v1 }
   0x6   :  { %149 = vmatprep.subr.mxu0 %v26_v4 }
   0x7   :  { %150 = vmatpush3.msra.mxu0 %v26_v4 }
   0x8   :  { %151 = vmatprep.subr.mxu0 %v25_v5  ;;  %v22_v7 = vld [vmem:[#allocation2 + $0x8] sm:$0xff]  ;;  %v21_v9 = vld [vmem:[#allocation2] sm:$0xff] }
   0x9   :  { %152 = vmatpush3.msra.mxu0 %v25_v5 }
   0xa   :  { %154 = vmatmul.mubr.msk.f32.vlgmr.msra.gmra.mxu0 %vm29_vm0, %v24_v6 }
  0xca   :  { %v155_v8 = vpop.f32.mrf.mxu0 }
  0xcb   :  { %v112_v10 = vadd.f32 %v155_v8, %v22_v7 }
  0xcc   :  { %v102_v11 = vpop.f32.mrf.mxu0 }
  0xcd   :  { %115 = vst.msk [vmem:[#allocation2 + $0x8] sm:$0xff] %vm18_vm1, %v112_v10  ;;  %v111_v12 = vadd.f32 %v102_v11, %v21_v9 }
  0xcf   :  { %114 = vst.msk [vmem:[#allocation2] sm:$0xff] %vm18_vm1, %v111_v12 }
  0xd4   :  { %v120_v14 = vld [vmem:[#allocation2 + $0x8] sm:$0xff] }
  0xd5   :  { %v129_v15 = vadd.f32 %v138_v13, %v120_v14 }
  0xd6   :  { %v119_v16 = vld [vmem:[#allocation2] sm:$0xff] }
  0xd7   :  { %131 = vst.msk [vmem:[%s216_s3 + $0x8] sm:$0xff] %vm18_vm1, %v129_v15  ;;  %v128_v17 = vadd.f32 %v138_v13, %v119_v16 }
  0xd9   :  { %130 = vst.msk [vmem:[%s216_s3] sm:$0xff] %vm18_vm1, %v128_v17 }

</bundles_post_ra>
